<compile_context>
chip_gen: v6e
topology: v6e:2x2x1
jax: 0.10.0
libtpu: 0.0.40
codegen_flags: <defaults>
</compile_context>

<pallas_src>
import functools
import math

import jax
import jax.numpy as jnp
from jax import lax
from jax.experimental import pallas as pl
from jax.experimental.pallas import tpu as pltpu


_NB_DEFAULT = 64                       # batch-tile size on the lane axis
_VMEM_LIMIT_BYTES = 32 * 1024 * 1024   # safe on v5e/v6e (128 MiB) and v7x (64 MiB)


# ---------------------------------------------------------------------------
# Pallas kernel: fused conv + bias + ReLU for one batch tile
# ---------------------------------------------------------------------------
def _conv_rows_kernel(x_ref, w_ref, b_ref, o_ref, *, stride, kh, kwq, oh, ow, nb, pwc):
    """relu(conv(x) + b) for one batch tile; one output row per loop step.

    x_ref: (Hu, S*C, Wq*NB)   bf16  phase-packed input slab (resident per step)
    w_ref: (OC, kwq*KH*S*C)   bf16  weights, column order (q, i, pw, c)
    b_ref: (OC, 1)            f32
    o_ref: (OH, OC, OW*NB)    bf16  lane-dense output rows
    """
    m = ow * nb
    khp = kh * pwc                       # rows per tap-group matmul
    w_all = w_ref[...]                   # resident, hoisted out of the row loop
    bias = b_ref[...]

    def row(r, carry):
        # (KH, S*C, Wq*NB) input slab for output row r: unit-stride slice only.
        slab = x_ref[pl.ds(r * stride, kh), :, :]
        acc = None
        for q in range(kwq):             # KW // S width-tap groups (2, 2, 3)
            rhs = slab[:, :, q * nb:q * nb + m].reshape(khp, m)
            lhs = w_all[:, q * khp:(q + 1) * khp]
            part = jnp.dot(lhs, rhs, preferred_element_type=jnp.float32)
            acc = part if acc is None else acc + part
        o_ref[r] = jnp.maximum(acc + bias, 0.0).astype(o_ref.dtype)
        return carry

    lax.fori_loop(0, oh, row, 0)


def _conv_layer(x_packed, w_packed, b_col, *, stride, kh, kwq, oh, ow, nb):
    nt, hu, pwc, wqnb = x_packed.shape
    oc, k = w_packed.shape
    kernel = functools.partial(
        _conv_rows_kernel, stride=stride, kh=kh, kwq=kwq, oh=oh, ow=ow, nb=nb, pwc=pwc)
    return pl.pallas_call(
        kernel,
        out_shape=jax.ShapeDtypeStruct((nt, oh, oc, ow * nb), jnp.bfloat16),
        grid=(nt,),
        in_specs=[
            pl.BlockSpec((None, hu, pwc, wqnb), lambda i: (i, 0, 0, 0)),  # act tile
            pl.BlockSpec((oc, k), lambda i: (0, 0)),                      # weights resident
            pl.BlockSpec((oc, 1), lambda i: (0, 0)),                      # bias resident
        ],
        out_specs=pl.BlockSpec((None, oh, oc, ow * nb), lambda i: (i, 0, 0, 0)),
        compiler_params=pltpu.CompilerParams(
            dimension_semantics=("parallel",),
            vmem_limit_bytes=_VMEM_LIMIT_BYTES,
        ),
    )(x_packed, w_packed, b_col)


# ---------------------------------------------------------------------------
# Layout plumbing (cheap XLA glue, ~1x activation bytes each)
# ---------------------------------------------------------------------------
def _pack_weights(w, stride):
    # w: (OC, C, KH, KW) torch OIHW -> (OC, K) with column order (q, i, pw, c),
    # where the width tap j = q*stride + pw.
    oc, c, kh, kw = w.shape
    assert kw % stride == 0, "AtariBody conv layers all have kw % stride == 0"
    kwq = kw // stride
    wp = w.reshape(oc, c, kh, kwq, stride)        # split KW -> (q, pw), pw minor
    wp = wp.transpose(0, 3, 2, 4, 1)              # (OC, q, KH, pw, C)
    return wp.reshape(oc, kwq * kh * stride * c).astype(jnp.bfloat16), kwq


def _pack_from_nchw(x, stride, kh, kw, nb):
    # x: (N, C, H, W) -> phase-packed (NT, Hu, stride*C, Wq*NB) bf16.
    n, c, h, w = x.shape
    oh = (h - kh) // stride + 1
    ow = (w - kw) // stride + 1
    hu = (oh - 1) * stride + kh
    wq = (kw - 1) // stride + ow
    wc = stride * wq                              # always <= w for these layers
    nt = -(-n // nb)
    if nt * nb != n:
        x = jnp.pad(x, ((0, nt * nb - n), (0, 0), (0, 0), (0, 0)))
    x = x[:, :, :hu, :wc].astype(jnp.bfloat16)
    x = x.reshape(nt, nb, c, hu, wq, stride)      # split W -> (wq, pw), pw minor
    x = x.transpose(0, 3, 5, 2, 4, 1)             # (NT, Hu, pw, C, Wq, NB)
    return x.reshape(nt, hu, stride * c, wq * nb), oh, ow


def _repack_for_next(a, stride, kh, kw, nb):
    # a: (NT, H, C, OWprev*NB) bf16 (kernel output layout) -> next layer's
    # phase-packed input (NT, Hu, stride*C, Wq*NB).  For stride==1 this is a
    # pure reshape (no data movement).
    nt, h, c, ownb = a.shape
    owp = ownb // nb
    oh = (h - kh) // stride + 1
    ow = (owp - kw) // stride + 1
    hu = (oh - 1) * stride + kh
    wq = (kw - 1) // stride + ow
    wc = stride * wq
    a = a[:, :hu, :, :]
    a = a.reshape(nt, hu, c, owp, nb)[:, :, :, :wc, :]
    a = a.reshape(nt, hu, c, wq, stride, nb)      # split OW -> (wq, pw), pw minor
    a = a.transpose(0, 1, 4, 2, 3, 5)             # (NT, Hu, pw, C, Wq, NB)
    return a.reshape(nt, hu, stride * c, wq * nb), oh, ow


def _unpack_to_flat(a, n, nb):
    # a: (NT, OH, OC, OW*NB) -> (N, OC*OH*OW) in torch's NCHW view(N, -1) order.
    nt, oh, oc, ownb = a.shape
    ow = ownb // nb
    a = a.reshape(nt, oh, oc, ow, nb)
    a = a.transpose(0, 4, 2, 1, 3)                # (NT, NB, OC, OH, OW)
    a = a.reshape(nt * nb, oc * oh * ow)
    return a[:n].astype(jnp.float32)


# ---------------------------------------------------------------------------
# AtariBody forward
# ---------------------------------------------------------------------------
def atari_body_forward(x_nchw, params, nb=_NB_DEFAULT):
    n = x_nchw.shape[0]
    nb = max(1, min(nb, n))

    w1p, kwq1 = _pack_weights(params["w1"], 4)
    w2p, kwq2 = _pack_weights(params["w2"], 2)
    w3p, kwq3 = _pack_weights(params["w3"], 1)
    b1 = params["b1"].astype(jnp.float32).reshape(-1, 1)
    b2 = params["b2"].astype(jnp.float32).reshape(-1, 1)
    b3 = params["b3"].astype(jnp.float32).reshape(-1, 1)

    x1, oh1, ow1 = _pack_from_nchw(x_nchw, 4, 8, 8, nb)
    a1 = _conv_layer(x1, w1p, b1, stride=4, kh=8, kwq=kwq1, oh=oh1, ow=ow1, nb=nb)

    x2, oh2, ow2 = _repack_for_next(a1, 2, 4, 4, nb)
    a2 = _conv_layer(x2, w2p, b2, stride=2, kh=4, kwq=kwq2, oh=oh2, ow=ow2, nb=nb)

    x3, oh3, ow3 = _repack_for_next(a2, 1, 3, 3, nb)
    a3 = _conv_layer(x3, w3p, b3, stride=1, kh=3, kwq=kwq3, oh=oh3, ow=ow3, nb=nb)

    return _unpack_to_flat(a3, n, nb)


def init_params(key, in_channels):
    def conv_init(k, oc, ic, kh, kw):
        fan_in = ic * kh * kw
        bound = 1.0 / math.sqrt(fan_in)
        kw_, kb_ = jax.random.split(k)
        w = jax.random.uniform(kw_, (oc, ic, kh, kw), jnp.float32, -bound, bound)
        b = jax.random.uniform(kb_, (oc,), jnp.float32, -bound, bound)
        return w, b

    k1, k2, k3 = jax.random.split(key, 3)
    w1, b1 = conv_init(k1, 32, in_channels, 8, 8)
    w2, b2 = conv_init(k2, 64, 32, 4, 4)
    w3, b3 = conv_init(k3, 64, 64, 3, 3)
    return {"w1": w1, "b1": b1, "w2": w2, "b2": b2, "w3": w3, "b3": b3}


# Pure-JAX f32 reference (sanity check for the Pallas path)
def _reference_forward(x, params):
    dn = ("NCHW", "OIHW", "NCHW")

    def conv(x, w, b, s):
        y = lax.conv_general_dilated(x, w, (s, s), "VALID",
                                     dimension_numbers=dn,
                                     precision=lax.Precision.HIGHEST)
        return jnp.maximum(y + b.reshape(1, -1, 1, 1), 0.0)

    x = conv(x, params["w1"], params["b1"], 4)
    x = conv(x, params["w2"], params["b2"], 2)
    x = conv(x, params["w3"], params["b3"], 1)
    return x.reshape(x.shape[0], -1)


if __name__ == "__main__":
    key = jax.random.PRNGKey(0)
    k_x, k_p = jax.random.split(key)

    # Canonical AtariBody input geometry (84x84 frames), tiny batch/channels.
    N, C, H, W = 2, 4, 84, 84
    x = jax.random.normal(k_x, (N, C, H, W), jnp.float32)
    params = init_params(k_p, C)

    fwd = jax.jit(atari_body_forward)
    out = jax.block_until_ready(fwd(x, params))

    ref = _reference_forward(x, params)
    assert out.shape == ref.shape == (N, 64 * 7 * 7), out.shape
    # bf16 matmul operands with f32 accumulation -> slightly looser tolerance.
    err = float(jnp.max(jnp.abs(out - ref)))
    assert jnp.allclose(out, ref, rtol=2e-2, atol=2e-2), err

    print("KERNEL_OK")
</pallas_src>

<mosaic_0001>
module attributes {stable_mosaic.version = 11 : i64} {
  func.func @_conv_rows_kernel(%arg0: i32, %arg1: memref<1x84x16x42xbf16, #tpu.memory_space<vmem>>, %arg2: memref<32x256xbf16, #tpu.memory_space<vmem>>, %arg3: memref<32x1xf32, #tpu.memory_space<vmem>>, %arg4: memref<1x20x32x40xbf16, #tpu.memory_space<vmem>>) attributes {dimension_semantics = [#tpu.dimension_semantics<parallel>], iteration_bounds = array<i64: 1>, scalar_prefetch = 0 : i64, scratch_operands = 0 : i64, tpu.core_type = #tpu.core_type<tc>, window_params = [{transform_indices = @transform_0, window_bounds = array<i64: 1, 84, 16, 42>}, {pipeline_mode = #tpu.pipeline_mode<synchronous>, transform_indices = @transform_1, window_bounds = array<i64: 32, 256>}, {pipeline_mode = #tpu.pipeline_mode<synchronous>, transform_indices = @transform_2, window_bounds = array<i64: 32, 1>}, {transform_indices = @transform_3, window_bounds = array<i64: 1, 20, 32, 40>}]} {
    %c0 = arith.constant 0 : index
    %c0_0 = arith.constant 0 : index
    %0 = vector.load %arg2[%c0, %c0_0] : memref<32x256xbf16, #tpu.memory_space<vmem>>, vector<32x256xbf16>
    %c0_1 = arith.constant 0 : index
    %c0_2 = arith.constant 0 : index
    %1 = vector.load %arg3[%c0_1, %c0_2] : memref<32x1xf32, #tpu.memory_space<vmem>>, vector<32x1xf32>
    %c0_i32 = arith.constant 0 : i32
    %c20_i32 = arith.constant 20 : i32
    %2 = arith.addi %c0_i32, %c20_i32 : i32
    %c1_i32 = arith.constant 1 : i32
    scf.for %arg5 = %c0_i32 to %2 step %c1_i32  : i32 {
      %c4_i32 = arith.constant 4 : i32
      %3 = arith.muli %arg5, %c4_i32 : i32
      %c0_4 = arith.constant 0 : index
      %4 = arith.index_cast %3 : i32 to index
      %c0_5 = arith.constant 0 : index
      %c0_6 = arith.constant 0 : index
      %5 = vector.load %arg1[%c0_4, %4, %c0_5, %c0_6] : memref<1x84x16x42xbf16, #tpu.memory_space<vmem>>, vector<1x8x16x42xbf16>
      %6 = vector.shape_cast %5 : vector<1x8x16x42xbf16> to vector<8x16x42xbf16>
      %7 = vector.extract_strided_slice %6 {offsets = [0, 0, 0], sizes = [8, 16, 40], strides = [1, 1, 1]} : vector<8x16x42xbf16> to vector<8x16x40xbf16>
      %8 = vector.shape_cast %7 : vector<8x16x40xbf16> to vector<128x40xbf16>
      %9 = vector.extract_strided_slice %0 {offsets = [0, 0], sizes = [32, 128], strides = [1, 1]} : vector<32x256xbf16> to vector<32x128xbf16>
      %cst = arith.constant dense<0.000000e+00> : vector<32x40xf32>
      %10 = tpu.matmul %9, %8, %cst {dimension_numbers = #tpu.dot_dimension_numbers<[1], [0], [0], [1], [0, 0, 1, 1], [], []>} : vector<32x128xbf16>, vector<128x40xbf16>, vector<32x40xf32> -> vector<32x40xf32>
      %11 = vector.extract_strided_slice %6 {offsets = [0, 0, 2], sizes = [8, 16, 40], strides = [1, 1, 1]} : vector<8x16x42xbf16> to vector<8x16x40xbf16>
      %12 = vector.shape_cast %11 : vector<8x16x40xbf16> to vector<128x40xbf16>
      %13 = vector.extract_strided_slice %0 {offsets = [0, 128], sizes = [32, 128], strides = [1, 1]} : vector<32x256xbf16> to vector<32x128xbf16>
      %cst_7 = arith.constant dense<0.000000e+00> : vector<32x40xf32>
      %14 = tpu.matmul %13, %12, %cst_7 {dimension_numbers = #tpu.dot_dimension_numbers<[1], [0], [0], [1], [0, 0, 1, 1], [], []>} : vector<32x128xbf16>, vector<128x40xbf16>, vector<32x40xf32> -> vector<32x40xf32>
      %15 = arith.addf %10, %14 : vector<32x40xf32>
      %16 = vector.broadcast %1 : vector<32x1xf32> to vector<32x40xf32>
      %17 = arith.addf %15, %16 : vector<32x40xf32>
      %cst_8 = arith.constant 0.000000e+00 : f32
      %18 = vector.broadcast %cst_8 : f32 to vector<32x40xf32>
      %19 = arith.maximumf %17, %18 : vector<32x40xf32>
      %20 = arith.truncf %19 : vector<32x40xf32> to vector<32x40xbf16>
      %c0_9 = arith.constant 0 : index
      %21 = arith.index_cast %arg5 : i32 to index
      %c0_10 = arith.constant 0 : index
      %c0_11 = arith.constant 0 : index
      %22 = vector.load %arg4[%c0_9, %21, %c0_10, %c0_11] : memref<1x20x32x40xbf16, #tpu.memory_space<vmem>>, vector<1x1x32x40xbf16>
      %23 = vector.shape_cast %22 : vector<1x1x32x40xbf16> to vector<32x40xbf16>
      %24 = vector.shape_cast %20 : vector<32x40xbf16> to vector<1x1x32x40xbf16>
      tpu.vector_store %arg4[%c0_9, %21, %c0_10, %c0_11], %24 {strides = array<i32>} : memref<1x20x32x40xbf16, #tpu.memory_space<vmem>>, vector<1x1x32x40xbf16>,
    }
    %c20_i32_3 = arith.constant 20 : i32
    return
  }
  func.func @transform_0(%arg0: i32) -> (i32, i32, i32, i32) {
    %c0_i32 = arith.constant 0 : i32
    %c0_i32_0 = arith.constant 0 : i32
    %c0_i32_1 = arith.constant 0 : i32
    %c0_i32_2 = arith.constant 0 : i32
    return %arg0, %c0_i32, %c0_i32_0, %c0_i32_1 : i32, i32, i32, i32
  }
  func.func @transform_1(%arg0: i32) -> (i32, i32) {
    %c0_i32 = arith.constant 0 : i32
    %c0_i32_0 = arith.constant 0 : i32
    %c0_i32_1 = arith.constant 0 : i32
    return %c0_i32, %c0_i32_0 : i32, i32
  }
  func.func @transform_2(%arg0: i32) -> (i32, i32) {
    %c0_i32 = arith.constant 0 : i32
    %c0_i32_0 = arith.constant 0 : i32
    %c0_i32_1 = arith.constant 0 : i32
    return %c0_i32, %c0_i32_0 : i32, i32
  }
  func.func @transform_3(%arg0: i32) -> (i32, i32, i32, i32) {
    %c0_i32 = arith.constant 0 : i32
    %c0_i32_0 = arith.constant 0 : i32
    %c0_i32_1 = arith.constant 0 : i32
    %c0_i32_2 = arith.constant 0 : i32
    return %arg0, %c0_i32, %c0_i32_0, %c0_i32_1 : i32, i32, i32, i32
  }
}

module attributes {stable_mosaic.version = 11 : i64} {
  func.func @_conv_rows_kernel(%arg0: i32, %arg1: memref<1x20x64x20xbf16, #tpu.memory_space<vmem>>, %arg2: memref<64x512xbf16, #tpu.memory_space<vmem>>, %arg3: memref<64x1xf32, #tpu.memory_space<vmem>>, %arg4: memref<1x9x64x18xbf16, #tpu.memory_space<vmem>>) attributes {dimension_semantics = [#tpu.dimension_semantics<parallel>], iteration_bounds = array<i64: 1>, scalar_prefetch = 0 : i64, scratch_operands = 0 : i64, tpu.core_type = #tpu.core_type<tc>, window_params = [{transform_indices = @transform_0, window_bounds = array<i64: 1, 20, 64, 20>}, {pipeline_mode = #tpu.pipeline_mode<synchronous>, transform_indices = @transform_1, window_bounds = array<i64: 64, 512>}, {pipeline_mode = #tpu.pipeline_mode<synchronous>, transform_indices = @transform_2, window_bounds = array<i64: 64, 1>}, {transform_indices = @transform_3, window_bounds = array<i64: 1, 9, 64, 18>}]} {
    %c0 = arith.constant 0 : index
    %c0_0 = arith.constant 0 : index
    %0 = vector.load %arg2[%c0, %c0_0] : memref<64x512xbf16, #tpu.memory_space<vmem>>, vector<64x512xbf16>
    %c0_1 = arith.constant 0 : index
    %c0_2 = arith.constant 0 : index
    %1 = vector.load %arg3[%c0_1, %c0_2] : memref<64x1xf32, #tpu.memory_space<vmem>>, vector<64x1xf32>
    %c0_i32 = arith.constant 0 : i32
    %c9_i32 = arith.constant 9 : i32
    %2 = arith.addi %c0_i32, %c9_i32 : i32
    %c1_i32 = arith.constant 1 : i32
    scf.for %arg5 = %c0_i32 to %2 step %c1_i32  : i32 {
      %c2_i32 = arith.constant 2 : i32
      %3 = arith.muli %arg5, %c2_i32 : i32
      %c0_4 = arith.constant 0 : index
      %4 = arith.index_cast %3 : i32 to index
      %c0_5 = arith.constant 0 : index
      %c0_6 = arith.constant 0 : index
      %5 = vector.load %arg1[%c0_4, %4, %c0_5, %c0_6] : memref<1x20x64x20xbf16, #tpu.memory_space<vmem>>, vector<1x4x64x20xbf16>
      %6 = vector.shape_cast %5 : vector<1x4x64x20xbf16> to vector<4x64x20xbf16>
      %7 = vector.extract_strided_slice %6 {offsets = [0, 0, 0], sizes = [4, 64, 18], strides = [1, 1, 1]} : vector<4x64x20xbf16> to vector<4x64x18xbf16>
      %8 = vector.shape_cast %7 : vector<4x64x18xbf16> to vector<256x18xbf16>
      %9 = vector.extract_strided_slice %0 {offsets = [0, 0], sizes = [64, 256], strides = [1, 1]} : vector<64x512xbf16> to vector<64x256xbf16>
      %cst = arith.constant dense<0.000000e+00> : vector<64x18xf32>
      %10 = tpu.matmul %9, %8, %cst {dimension_numbers = #tpu.dot_dimension_numbers<[1], [0], [0], [1], [0, 0, 1, 1], [], []>} : vector<64x256xbf16>, vector<256x18xbf16>, vector<64x18xf32> -> vector<64x18xf32>
      %11 = vector.extract_strided_slice %6 {offsets = [0, 0, 2], sizes = [4, 64, 18], strides = [1, 1, 1]} : vector<4x64x20xbf16> to vector<4x64x18xbf16>
      %12 = vector.shape_cast %11 : vector<4x64x18xbf16> to vector<256x18xbf16>
      %13 = vector.extract_strided_slice %0 {offsets = [0, 256], sizes = [64, 256], strides = [1, 1]} : vector<64x512xbf16> to vector<64x256xbf16>
      %cst_7 = arith.constant dense<0.000000e+00> : vector<64x18xf32>
      %14 = tpu.matmul %13, %12, %cst_7 {dimension_numbers = #tpu.dot_dimension_numbers<[1], [0], [0], [1], [0, 0, 1, 1], [], []>} : vector<64x256xbf16>, vector<256x18xbf16>, vector<64x18xf32> -> vector<64x18xf32>
      %15 = arith.addf %10, %14 : vector<64x18xf32>
      %16 = vector.broadcast %1 : vector<64x1xf32> to vector<64x18xf32>
      %17 = arith.addf %15, %16 : vector<64x18xf32>
      %cst_8 = arith.constant 0.000000e+00 : f32
      %18 = vector.broadcast %cst_8 : f32 to vector<64x18xf32>
      %19 = arith.maximumf %17, %18 : vector<64x18xf32>
      %20 = arith.truncf %19 : vector<64x18xf32> to vector<64x18xbf16>
      %c0_9 = arith.constant 0 : index
      %21 = arith.index_cast %arg5 : i32 to index
      %c0_10 = arith.constant 0 : index
      %c0_11 = arith.constant 0 : index
      %22 = vector.load %arg4[%c0_9, %21, %c0_10, %c0_11] : memref<1x9x64x18xbf16, #tpu.memory_space<vmem>>, vector<1x1x64x18xbf16>
      %23 = vector.shape_cast %22 : vector<1x1x64x18xbf16> to vector<64x18xbf16>
      %24 = vector.shape_cast %20 : vector<64x18xbf16> to vector<1x1x64x18xbf16>
      tpu.vector_store %arg4[%c0_9, %21, %c0_10, %c0_11], %24 {strides = array<i32>} : memref<1x9x64x18xbf16, #tpu.memory_space<vmem>>, vector<1x1x64x18xbf16>,
    }
    %c9_i32_3 = arith.constant 9 : i32
    return
  }
  func.func @transform_0(%arg0: i32) -> (i32, i32, i32, i32) {
    %c0_i32 = arith.constant 0 : i32
    %c0_i32_0 = arith.constant 0 : i32
    %c0_i32_1 = arith.constant 0 : i32
    %c0_i32_2 = arith.constant 0 : i32
    return %arg0, %c0_i32, %c0_i32_0, %c0_i32_1 : i32, i32, i32, i32
  }
  func.func @transform_1(%arg0: i32) -> (i32, i32) {
    %c0_i32 = arith.constant 0 : i32
    %c0_i32_0 = arith.constant 0 : i32
    %c0_i32_1 = arith.constant 0 : i32
    return %c0_i32, %c0_i32_0 : i32, i32
  }
  func.func @transform_2(%arg0: i32) -> (i32, i32) {
    %c0_i32 = arith.constant 0 : i32
    %c0_i32_0 = arith.constant 0 : i32
    %c0_i32_1 = arith.constant 0 : i32
    return %c0_i32, %c0_i32_0 : i32, i32
  }
  func.func @transform_3(%arg0: i32) -> (i32, i32, i32, i32) {
    %c0_i32 = arith.constant 0 : i32
    %c0_i32_0 = arith.constant 0 : i32
    %c0_i32_1 = arith.constant 0 : i32
    %c0_i32_2 = arith.constant 0 : i32
    return %arg0, %c0_i32, %c0_i32_0, %c0_i32_1 : i32, i32, i32, i32
  }
}

module attributes {stable_mosaic.version = 11 : i64} {
  func.func @_conv_rows_kernel(%arg0: i32, %arg1: memref<1x9x64x18xbf16, #tpu.memory_space<vmem>>, %arg2: memref<64x576xbf16, #tpu.memory_space<vmem>>, %arg3: memref<64x1xf32, #tpu.memory_space<vmem>>, %arg4: memref<1x7x64x14xbf16, #tpu.memory_space<vmem>>) attributes {dimension_semantics = [#tpu.dimension_semantics<parallel>], iteration_bounds = array<i64: 1>, scalar_prefetch = 0 : i64, scratch_operands = 0 : i64, tpu.core_type = #tpu.core_type<tc>, window_params = [{transform_indices = @transform_0, window_bounds = array<i64: 1, 9, 64, 18>}, {pipeline_mode = #tpu.pipeline_mode<synchronous>, transform_indices = @transform_1, window_bounds = array<i64: 64, 576>}, {pipeline_mode = #tpu.pipeline_mode<synchronous>, transform_indices = @transform_2, window_bounds = array<i64: 64, 1>}, {transform_indices = @transform_3, window_bounds = array<i64: 1, 7, 64, 14>}]} {
    %c0 = arith.constant 0 : index
    %c0_0 = arith.constant 0 : index
    %0 = vector.load %arg2[%c0, %c0_0] : memref<64x576xbf16, #tpu.memory_space<vmem>>, vector<64x576xbf16>
    %c0_1 = arith.constant 0 : index
    %c0_2 = arith.constant 0 : index
    %1 = vector.load %arg3[%c0_1, %c0_2] : memref<64x1xf32, #tpu.memory_space<vmem>>, vector<64x1xf32>
    %c0_i32 = arith.constant 0 : i32
    %c7_i32 = arith.constant 7 : i32
    %2 = arith.addi %c0_i32, %c7_i32 : i32
    %c1_i32 = arith.constant 1 : i32
    scf.for %arg5 = %c0_i32 to %2 step %c1_i32  : i32 {
      %c1_i32_4 = arith.constant 1 : i32
      %3 = arith.muli %arg5, %c1_i32_4 : i32
      %c0_5 = arith.constant 0 : index
      %4 = arith.index_cast %3 : i32 to index
      %c0_6 = arith.constant 0 : index
      %c0_7 = arith.constant 0 : index
      %5 = vector.load %arg1[%c0_5, %4, %c0_6, %c0_7] : memref<1x9x64x18xbf16, #tpu.memory_space<vmem>>, vector<1x3x64x18xbf16>
      %6 = vector.shape_cast %5 : vector<1x3x64x18xbf16> to vector<3x64x18xbf16>
      %7 = vector.extract_strided_slice %6 {offsets = [0, 0, 0], sizes = [3, 64, 14], strides = [1, 1, 1]} : vector<3x64x18xbf16> to vector<3x64x14xbf16>
      %8 = vector.shape_cast %7 : vector<3x64x14xbf16> to vector<192x14xbf16>
      %9 = vector.extract_strided_slice %0 {offsets = [0, 0], sizes = [64, 192], strides = [1, 1]} : vector<64x576xbf16> to vector<64x192xbf16>
      %cst = arith.constant dense<0.000000e+00> : vector<64x14xf32>
      %10 = tpu.matmul %9, %8, %cst {dimension_numbers = #tpu.dot_dimension_numbers<[1], [0], [0], [1], [0, 0, 1, 1], [], []>} : vector<64x192xbf16>, vector<192x14xbf16>, vector<64x14xf32> -> vector<64x14xf32>
      %11 = vector.extract_strided_slice %6 {offsets = [0, 0, 2], sizes = [3, 64, 14], strides = [1, 1, 1]} : vector<3x64x18xbf16> to vector<3x64x14xbf16>
      %12 = vector.shape_cast %11 : vector<3x64x14xbf16> to vector<192x14xbf16>
      %13 = vector.extract_strided_slice %0 {offsets = [0, 192], sizes = [64, 192], strides = [1, 1]} : vector<64x576xbf16> to vector<64x192xbf16>
      %cst_8 = arith.constant dense<0.000000e+00> : vector<64x14xf32>
      %14 = tpu.matmul %13, %12, %cst_8 {dimension_numbers = #tpu.dot_dimension_numbers<[1], [0], [0], [1], [0, 0, 1, 1], [], []>} : vector<64x192xbf16>, vector<192x14xbf16>, vector<64x14xf32> -> vector<64x14xf32>
      %15 = arith.addf %10, %14 : vector<64x14xf32>
      %16 = vector.extract_strided_slice %6 {offsets = [0, 0, 4], sizes = [3, 64, 14], strides = [1, 1, 1]} : vector<3x64x18xbf16> to vector<3x64x14xbf16>
      %17 = vector.shape_cast %16 : vector<3x64x14xbf16> to vector<192x14xbf16>
      %18 = vector.extract_strided_slice %0 {offsets = [0, 384], sizes = [64, 192], strides = [1, 1]} : vector<64x576xbf16> to vector<64x192xbf16>
      %cst_9 = arith.constant dense<0.000000e+00> : vector<64x14xf32>
      %19 = tpu.matmul %18, %17, %cst_9 {dimension_numbers = #tpu.dot_dimension_numbers<[1], [0], [0], [1], [0, 0, 1, 1], [], []>} : vector<64x192xbf16>, vector<192x14xbf16>, vector<64x14xf32> -> vector<64x14xf32>
      %20 = arith.addf %15, %19 : vector<64x14xf32>
      %21 = vector.broadcast %1 : vector<64x1xf32> to vector<64x14xf32>
      %22 = arith.addf %20, %21 : vector<64x14xf32>
      %cst_10 = arith.constant 0.000000e+00 : f32
      %23 = vector.broadcast %cst_10 : f32 to vector<64x14xf32>
      %24 = arith.maximumf %22, %23 : vector<64x14xf32>
      %25 = arith.truncf %24 : vector<64x14xf32> to vector<64x14xbf16>
      %c0_11 = arith.constant 0 : index
      %26 = arith.index_cast %arg5 : i32 to index
      %c0_12 = arith.constant 0 : index
      %c0_13 = arith.constant 0 : index
      %27 = vector.load %arg4[%c0_11, %26, %c0_12, %c0_13] : memref<1x7x64x14xbf16, #tpu.memory_space<vmem>>, vector<1x1x64x14xbf16>
      %28 = vector.shape_cast %27 : vector<1x1x64x14xbf16> to vector<64x14xbf16>
      %29 = vector.shape_cast %25 : vector<64x14xbf16> to vector<1x1x64x14xbf16>
      tpu.vector_store %arg4[%c0_11, %26, %c0_12, %c0_13], %29 {strides = array<i32>} : memref<1x7x64x14xbf16, #tpu.memory_space<vmem>>, vector<1x1x64x14xbf16>,
    }
    %c7_i32_3 = arith.constant 7 : i32
    return
  }
  func.func @transform_0(%arg0: i32) -> (i32, i32, i32, i32) {
    %c0_i32 = arith.constant 0 : i32
    %c0_i32_0 = arith.constant 0 : i32
    %c0_i32_1 = arith.constant 0 : i32
    %c0_i32_2 = arith.constant 0 : i32
    return %arg0, %c0_i32, %c0_i32_0, %c0_i32_1 : i32, i32, i32, i32
  }
  func.func @transform_1(%arg0: i32) -> (i32, i32) {
    %c0_i32 = arith.constant 0 : i32
    %c0_i32_0 = arith.constant 0 : i32
    %c0_i32_1 = arith.constant 0 : i32
    return %c0_i32, %c0_i32_0 : i32, i32
  }
  func.func @transform_2(%arg0: i32) -> (i32, i32) {
    %c0_i32 = arith.constant 0 : i32
    %c0_i32_0 = arith.constant 0 : i32
    %c0_i32_1 = arith.constant 0 : i32
    return %c0_i32, %c0_i32_0 : i32, i32
  }
  func.func @transform_3(%arg0: i32) -> (i32, i32, i32, i32) {
    %c0_i32 = arith.constant 0 : i32
    %c0_i32_0 = arith.constant 0 : i32
    %c0_i32_1 = arith.constant 0 : i32
    %c0_i32_2 = arith.constant 0 : i32
    return %arg0, %c0_i32, %c0_i32_0, %c0_i32_1 : i32, i32, i32, i32
  }
}

</mosaic_0001>

<bundles_post_ra>
// kernel: atari_body_forward.3
= control target key start
LH: loop header
LB: loop body
LE: loop exit
PB: predicated region body
PF: predicated region fallthrough
CT: control target
= control target key end

     0   :  { %s508_s0 = inlined_call_operand.vmem [shape: bf16[1,84,16,42], index: 0, kind: input, shape index: {}]   ;;  %s509_s1 = inlined_call_operand.vmem [shape: bf16[32,256], index: 1, kind: input, shape index: {}]   ;;  %s510_s2 = inlined_call_operand.vmem [shape: f32[32,1], index: 2, kind: input, shape index: {}]   ;;  %s511_s3 = inlined_call_operand.vmem [shape: bf16[1,20,32,40], index: 3, kind: output, shape index: {}]  }
   0x1   :  { %v443_v0 = vld [vmem:[%s509_s1] sm:$0xff]  ;;  %v448_v1 = vld [vmem:[%s509_s1 + $0x8] sm:$0xff]  ;;  %v453_v2 = vld [vmem:[%s509_s1 + $0x10] sm:$0xff] }
   0x2   :  { %v458_v3 = vld [vmem:[%s509_s1 + $0x18] sm:$0xff]  ;;  %v463_v4 = vld [vmem:[%s510_s2] sm:$0xff]  ;;  %v468_v5 = vld [vmem:[%s510_s2 + $0x8] sm:$0xff]  ;;  %s480_s1 = smov 0  }
   0x3   :  { %v473_v6 = vld [vmem:[%s510_s2 + $0x10] sm:$0xff]  ;;  %v478_v7 = vld [vmem:[%s510_s2 + $0x18] sm:$0xff] }
   0x4 LB: > { %s324_s28 = sshll.u32 %s416_s1, 5  ;;  %s418_s5 = smov 126   ;;  %v316_v16 = vcombine.low %v443_v0, %v448_v1  ;;  %v306_v17 = vcombine.high %v443_v0, %v448_v1  ;;  %v419_v18 = vmov 0   ;;  %v317_v19 = vcombine.low %v453_v2, %v458_v3  ;;  %s416_s1 = sphi %s480_s1, %s28_s1  }
   0x5   : > { %s32_s4 = scalar_lea.vmem %s508_s0, %s324_s28  ;;  %401 = vset.pattern.permute.xlu1 %v419_v18  ;;  %400 = vset.pattern.permute.xlu0 %v419_v18  ;;  %v307_v28 = vcombine.high %v453_v2, %v458_v3  ;;  %s329_s2 = sshll.u32 %s416_s1, 4  ;;  %vm285_vm0 = vcmask 322560  }
   0x6   : > { %v402_v8 = vld [vmem:[%s32_s4 + $0x38] sm:$0xff]   ;;  %v403_v9 = vld [vmem:[%s32_s4 + $0x30] sm:$0xff]   ;;  %v404_v10 = vld [vmem:[%s32_s4 + $0x28] sm:$0xff]   ;;  %386 = vmatprep.mubr.bf16.mxu1 %v316_v16  ;;  %366 = vmatprep.mubr.bf16.mxu0 %v306_v17  ;;  %s284_s8 = scalar_lea.vmem %s511_s3, %s329_s2  ;;  %s28_s1 = sadd.s32 1, %s416_s1  }
   0x7   : > { %115 = vrot.lane.b32.xlu0 %v402_v8, %s418_s5  ;;  %370 = vmatprep.subr.bf16.mxu1 %v402_v8  ;;  %v405_v11 = vld [vmem:[%s32_s4 + $0x20] sm:$0xff]   ;;  %v406_v12 = vld [vmem:[%s32_s4 + $0x18] sm:$0xff]   ;;  %v407_v13 = vld [vmem:[%s32_s4 + $0x10] sm:$0xff]   ;;  %p25_p0 = scmp.ge.s32.totalorder %s28_s1, 20  }
   0x8   : > { %371 = vmatpush3.bf16.msra.mxu1 %v402_v8  ;;  %111 = vrot.lane.b32.xlu1 %v404_v10, %s418_s5  ;;  %v408_v14 = vld [vmem:[%s32_s4 + $0x8] sm:$0xff]   ;;  %v409_v15 = vld [vmem:[%s32_s4] sm:$0xff]  }
   0x9   : > { %372 = vmatprep.subr.bf16.mxu1 %v403_v9 }
   0xb   : > { %113 = vrot.lane.b32.xlu0 %v403_v9, %s418_s5 }
   0xc   : > { %373 = vmatpush3.bf16.msra.mxu1 %v403_v9  ;;  %109 = vrot.lane.b32.xlu1 %v405_v11, %s418_s5 }
   0xd   : > { %374 = vmatprep.subr.bf16.mxu1 %v404_v10 }
   0xf   : > { %107 = vrot.lane.b32.xlu0 %v406_v12, %s418_s5 }
  0x10   : > { %375 = vmatpush3.bf16.msra.mxu1 %v404_v10  ;;  %105 = vrot.lane.b32.xlu1 %v407_v13, %s418_s5 }
  0x11   : > { %376 = vmatprep.subr.bf16.mxu1 %v405_v11 }
  0x13   : > { %103 = vrot.lane.b32.xlu0 %v408_v14, %s418_s5 }
  0x14   : > { %377 = vmatpush3.bf16.msra.mxu1 %v405_v11  ;;  %101 = vrot.lane.b32.xlu1 %v409_v15, %s418_s5 }
  0x15   : > { %378 = vmatprep.subr.bf16.mxu1 %v406_v12 }
  0x17   : > { %241 = vperm.xlu0 %400, %v463_v4  }
  0x18   : > { %379 = vmatpush3.bf16.msra.mxu1 %v406_v12  ;;  %246 = vperm.xlu1 %401, %v468_v5  }
  0x19   : > { %380 = vmatprep.subr.bf16.mxu1 %v407_v13 }
  0x1b   : > { %256 = vperm.xlu0 %400, %v478_v7  }
  0x1c   : > { %381 = vmatpush3.bf16.msra.mxu1 %v407_v13  ;;  %251 = vperm.xlu1 %401, %v473_v6  }
  0x1d   : > { %382 = vmatprep.subr.bf16.mxu1 %v408_v14 }
  0x20   : > { %383 = vmatpush3.bf16.msra.mxu1 %v408_v14 }
  0x21   : > { %384 = vmatprep.subr.bf16.mxu1 %v409_v15 }
  0x24   : > { %385 = vmatpush3.bf16.msra.mxu1 %v409_v15 }
  0x27   : > { %387 = vmatmul.mubr.bf16.vlgmr.msra.gmra.mxu1 %v317_v19 }
  0x79   : > { %v116_v20 = vpop.permute.xlu0 %115 }
  0x7a   : > { %350 = vmatprep.subr.bf16.mxu0 %v116_v20  ;;  %v112_v21 = vpop.permute.xlu1 %111 }
  0x7b   : > { %351 = vmatpush3.bf16.msra.mxu0 %v116_v20 }
  0x7d   : > { %v114_v22 = vpop.permute.xlu0 %113 }
  0x7e   : > { %352 = vmatprep.subr.bf16.mxu0 %v114_v22  ;;  %v110_v23 = vpop.permute.xlu1 %109 }
  0x7f   : > { %353 = vmatpush3.bf16.msra.mxu0 %v114_v22 }
  0x80   : > { %354 = vmatprep.subr.bf16.mxu0 %v112_v21 }
  0x81   : > { %v108_v24 = vpop.permute.xlu0 %107 }
  0x82   : > { %v106_v25 = vpop.permute.xlu1 %105 }
  0x83   : > { %355 = vmatpush3.bf16.msra.mxu0 %v112_v21 }
  0x84   : > { %356 = vmatprep.subr.bf16.mxu0 %v110_v23 }
  0x85   : > { %v104_v26 = vpop.permute.xlu0 %103 }
  0x86   : > { %v102_v27 = vpop.permute.xlu1 %101 }
  0x87   : > { %357 = vmatpush3.bf16.msra.mxu0 %v110_v23 }
  0x88   : > { %358 = vmatprep.subr.bf16.mxu0 %v108_v24 }
  0x8b   : > { %359 = vmatpush3.bf16.msra.mxu0 %v108_v24 }
  0x8c   : > { %360 = vmatprep.subr.bf16.mxu0 %v106_v25 }
  0x8f   : > { %361 = vmatpush3.bf16.msra.mxu0 %v106_v25 }
  0x90   : > { %362 = vmatprep.subr.bf16.mxu0 %v104_v26 }
  0x92   : > { %v242_v32 = vpop.permute.xlu0 %241 }
  0x93   : > { %363 = vmatpush3.bf16.msra.mxu0 %v104_v26  ;;  %v247_v30 = vpop.permute.xlu1 %246 }
  0x94   : > { %364 = vmatprep.subr.bf16.mxu0 %v102_v27 }
  0x96   : > { %v257_v43 = vpop.permute.xlu0 %256 }
  0x97   : > { %365 = vmatpush3.bf16.msra.mxu0 %v102_v27  ;;  %v252_v34 = vpop.permute.xlu1 %251 }
  0x9a   : > { %367 = vmatmul.mubr.bf16.vlgmr.msra.gmra.mxu0 %v307_v28 }
  0xe7   : > { %v388_v29 = vpop.f32.mrf.mxu1 }
  0xe9   : > { %v224_v31 = vpop.f32.mrf.mxu1 }
  0xeb   : > { %v389_v36 = vpop.f32.mrf.mxu1 }
  0xed   : > { %v227_v45 = vpop.f32.mrf.mxu1 }
 0x15a   : > { %v368_v33 = vpop.f32.mrf.mxu0 }
 0x15b   : > { %v233_v35 = vadd.f32 %v388_v29, %v368_v33 }
 0x15c   : > { %v159_v37 = vpop.f32.mrf.mxu0 }
 0x15d   : > { %v225_v38 = vadd.f32 %v224_v31, %v159_v37  ;;  %v261_v39 = vadd.f32 %v252_v34, %v233_v35 }
 0x15e   : > { %v369_v40 = vpop.f32.mrf.mxu0 }
 0x15f   : > { %v259_v41 = vadd.f32 %v242_v32, %v225_v38  ;;  %v265_v42 = vmax.f32 %v261_v39, 0.0  ;;  %v236_v44 = vadd.f32 %v389_v36, %v369_v40 }
 0x160   : > { %v162_v46 = vpop.f32.mrf.mxu0 }
 0x161   : > { %v263_v47 = vmax.f32 %v259_v41, 0.0  ;;  %v327_v48 = vpack.c.bf16 %v265_v42, %v265_v42  ;;  %v262_v49 = vadd.f32 %v257_v43, %v236_v44  ;;  %v228_v50 = vadd.f32 %v227_v45, %v162_v46 }
 0x163   : > { %v325_v51 = vpack.c.bf16 %v263_v47, %v263_v47  ;;  %288 = vst.msk [vmem:[%s284_s8 + $0x8] sm:$0xf] %vm285_vm0, %v327_v48  ;;  %v266_v52 = vmax.f32 %v262_v49, 0.0  ;;  %v260_v53 = vadd.f32 %v247_v30, %v228_v50 }
 0x165   : > { %286 = vst.msk [vmem:[%s284_s8] sm:$0xf] %vm285_vm0, %v325_v51  ;;  %v328_v54 = vpack.c.bf16 %v266_v52, %v266_v52  ;;  %v264_v55 = vmax.f32 %v260_v53, 0.0  ;;  %27 = sbr.rel (!%p25_p0) target bundleno = 4 (0x4), region = 41 }
 0x167   : > { %289 = vst.msk [vmem:[%s284_s8 + $0xc] sm:$0xf] %vm285_vm0, %v328_v54  ;;  %v326_v56 = vpack.c.bf16 %v264_v55, %v264_v55 }
 0x169   : > { %287 = vst.msk [vmem:[%s284_s8 + $0x4] sm:$0xf] %vm285_vm0, %v326_v56 }

// kernel: atari_body_forward.4
= control target key start
LH: loop header
LB: loop body
LE: loop exit
PB: predicated region body
PF: predicated region fallthrough
CT: control target
= control target key end

     0   :  { %s862_s5 = smov 0   ;;  %s970_s0 = inlined_call_operand.vmem [shape: bf16[1,20,64,20], index: 0, kind: input, shape index: {}]   ;;  %s971_s1 = inlined_call_operand.vmem [shape: bf16[64,512], index: 1, kind: input, shape index: {}]   ;;  %s972_s3 = inlined_call_operand.vmem [shape: bf16[1,9,64,18], index: 3, kind: output, shape index: {}]   ;;  %s973_s2 = inlined_call_operand.vmem [shape: f32[64,1], index: 2, kind: input, shape index: {}]  }
   0x1   :  { %v745_v0 = vld [vmem:[%s971_s1] sm:$0xff]  ;;  %v750_v1 = vld [vmem:[%s971_s1 + $0x8] sm:$0xff]  ;;  %v755_v2 = vld [vmem:[%s971_s1 + $0x10] sm:$0xff] }
   0x2   :  { %v760_v3 = vld [vmem:[%s971_s1 + $0x18] sm:$0xff]  ;;  %v765_v4 = vld [vmem:[%s971_s1 + $0x20] sm:$0xff]  ;;  %v770_v5 = vld [vmem:[%s971_s1 + $0x28] sm:$0xff] }
   0x3   :  { %v775_v6 = vld [vmem:[%s971_s1 + $0x30] sm:$0xff]  ;;  %v780_v7 = vld [vmem:[%s971_s1 + $0x38] sm:$0xff]  ;;  %v785_v8 = vld [vmem:[%s971_s1 + $0x40] sm:$0xff] }
   0x4   :  { %v790_v9 = vld [vmem:[%s971_s1 + $0x48] sm:$0xff]  ;;  %v795_v10 = vld [vmem:[%s971_s1 + $0x50] sm:$0xff]  ;;  %v800_v11 = vld [vmem:[%s971_s1 + $0x58] sm:$0xff] }
   0x5   :  { %v805_v12 = vld [vmem:[%s971_s1 + $0x60] sm:$0xff]  ;;  %v810_v13 = vld [vmem:[%s971_s1 + $0x68] sm:$0xff]  ;;  %v815_v14 = vld [vmem:[%s971_s1 + $0x70] sm:$0xff] }
   0x6   :  { %v820_v15 = vld [vmem:[%s971_s1 + $0x78] sm:$0xff]  ;;  %v825_v16 = vld [vmem:[%s973_s2] sm:$0xff]  ;;  %v830_v17 = vld [vmem:[%s973_s2 + $0x8] sm:$0xff] }
   0x7   :  { %v835_v18 = vld [vmem:[%s973_s2 + $0x10] sm:$0xff]  ;;  %v840_v19 = vld [vmem:[%s973_s2 + $0x18] sm:$0xff]  ;;  %v845_v20 = vld [vmem:[%s973_s2 + $0x20] sm:$0xff] }
   0x8   :  { %v850_v21 = vld [vmem:[%s973_s2 + $0x28] sm:$0xff]  ;;  %v855_v22 = vld [vmem:[%s973_s2 + $0x30] sm:$0xff]  ;;  %v860_v23 = vld [vmem:[%s973_s2 + $0x38] sm:$0xff] }
   0x9 LB: > { %s594_s6 = sshll.u32 %s718_s5, 6  ;;  %s720_s2 = smov 126   ;;  %v576_v34 = vcombine.high %v745_v0, %v755_v2  ;;  %v552_v37 = vcombine.high %v750_v1, %v760_v3  ;;  %v575_v42 = vcombine.low %v745_v0, %v755_v2  ;;  %v578_v43 = vcombine.high %v765_v4, %v775_v6  ;;  %s718_s5 = sphi %s862_s5, %s44_s5  }
   0xa   : > { %s871_s9 = scalar_lea.vmem %s970_s0, %s594_s6  ;;  %v577_v44 = vcombine.low %v765_v4, %v775_v6  ;;  %v580_v45 = vcombine.high %v785_v8, %v795_v10  ;;  %v579_v46 = vcombine.low %v785_v8, %v795_v10  ;;  %v582_v47 = vcombine.high %v805_v12, %v815_v14  ;;  %s603_s10 = sshll.u32 %s718_s5, 5 }
   0xb   : > { %v696_v24 = vld [vmem:[%s871_s9 + $0x78] sm:$0xff]   ;;  %v697_v25 = vld [vmem:[%s871_s9 + $0x70] sm:$0xff]   ;;  %v700_v28 = vld [vmem:[%s871_s9 + $0x68] sm:$0xff]   ;;  %402 = vmatprep.mubr.bf16.mxu1 %v576_v34  ;;  %281 = vmatprep.mubr.bf16.mxu0 %v552_v37  ;;  %v721_v48 = vmov 0   ;;  %v581_v49 = vcombine.low %v805_v12, %v815_v14  ;;  %s949_s13 = scalar_lea.vmem %s972_s3, %s603_s10  ;;  %vm526_vm0 = vcmask 142336   ;;  %s44_s5 = sadd.s32 1, %s718_s5  }
   0xc   : > { %231 = vrot.lane.b32.xlu0 %v696_v24, %s720_s2  ;;  %v698_v26 = vld [vmem:[%s871_s9 + $0x38] sm:$0xff]   ;;  %644 = vmatprep.subr.bf16.mxu1 %v696_v24  ;;  %v699_v27 = vld [vmem:[%s871_s9 + $0x30] sm:$0xff]   ;;  %v701_v29 = vld [vmem:[%s871_s9 + $0x28] sm:$0xff]   ;;  %p41_p0 = scmp.ge.s32.totalorder %s44_s5, 9  }
   0xd   : > { %229 = vrot.lane.b32.xlu1 %v697_v25, %s720_s2  ;;  %645 = vmatpush3.bf16.msra.mxu1 %v698_v26  ;;  %v702_v30 = vld [vmem:[%s871_s9 + $0x60] sm:$0xff]   ;;  %v704_v32 = vld [vmem:[%s871_s9 + $0x58] sm:$0xff]   ;;  %v706_v35 = vld [vmem:[%s871_s9 + $0x50] sm:$0xff]  }
   0xe   : > { %646 = vmatprep.subr.bf16.mxu1 %v697_v25  ;;  %v703_v31 = vld [vmem:[%s871_s9 + $0x20] sm:$0xff]   ;;  %v705_v33 = vld [vmem:[%s871_s9 + $0x18] sm:$0xff]   ;;  %v707_v36 = vld [vmem:[%s871_s9 + $0x10] sm:$0xff]   ;;  %694 = vset.pattern.permute.xlu0 %v721_v48 }
   0xf   : > { %v708_v38 = vld [vmem:[%s871_s9 + $0x48] sm:$0xff]   ;;  %v710_v40 = vld [vmem:[%s871_s9 + $0x40] sm:$0xff]   ;;  %695 = vset.pattern.permute.xlu1 %v721_v48 }
  0x10   : > { %215 = vrot.lane.b32.xlu0 %v698_v26, %s720_s2  ;;  %v709_v39 = vld [vmem:[%s871_s9 + $0x8] sm:$0xff]   ;;  %v711_v41 = vld [vmem:[%s871_s9] sm:$0xff]   ;;  %v551_v26 = vcombine.low %v750_v1, %v760_v3 }
  0x11   : > { %213 = vrot.lane.b32.xlu1 %v699_v27, %s720_s2  ;;  %647 = vmatpush3.bf16.msra.mxu1 %v699_v27  ;;  %v554_v27 = vcombine.high %v770_v5, %v780_v7 }
  0x12   : > { %648 = vmatprep.subr.bf16.mxu1 %v700_v28 }
  0x14   : > { %227 = vrot.lane.b32.xlu0 %v700_v28, %s720_s2  ;;  %v553_v28 = vcombine.low %v770_v5, %v780_v7 }
  0x15   : > { %211 = vrot.lane.b32.xlu1 %v701_v29, %s720_s2  ;;  %649 = vmatpush3.bf16.msra.mxu1 %v701_v29  ;;  %v556_v29 = vcombine.high %v790_v9, %v800_v11 }
  0x16   : > { %650 = vmatprep.subr.bf16.mxu1 %v702_v30 }
  0x18   : > { %225 = vrot.lane.b32.xlu0 %v702_v30, %s720_s2  ;;  %v555_v30 = vcombine.low %v790_v9, %v800_v11 }
  0x19   : > { %209 = vrot.lane.b32.xlu1 %v703_v31, %s720_s2  ;;  %651 = vmatpush3.bf16.msra.mxu1 %v703_v31  ;;  %v558_v31 = vcombine.high %v810_v13, %v820_v15 }
  0x1a   : > { %652 = vmatprep.subr.bf16.mxu1 %v704_v32 }
  0x1c   : > { %223 = vrot.lane.b32.xlu0 %v704_v32, %s720_s2  ;;  %v557_v32 = vcombine.low %v810_v13, %v820_v15 }
  0x1d   : > { %207 = vrot.lane.b32.xlu1 %v705_v33, %s720_s2  ;;  %653 = vmatpush3.bf16.msra.mxu1 %v705_v33 }
  0x1e   : > { %654 = vmatprep.subr.bf16.mxu1 %v706_v35 }
  0x20   : > { %221 = vrot.lane.b32.xlu0 %v706_v35, %s720_s2 }
  0x21   : > { %205 = vrot.lane.b32.xlu1 %v707_v36, %s720_s2  ;;  %655 = vmatpush3.bf16.msra.mxu1 %v707_v36 }
  0x22   : > { %656 = vmatprep.subr.bf16.mxu1 %v708_v38 }
  0x24   : > { %219 = vrot.lane.b32.xlu0 %v708_v38, %s720_s2 }
  0x25   : > { %203 = vrot.lane.b32.xlu1 %v709_v39, %s720_s2  ;;  %657 = vmatpush3.bf16.msra.mxu1 %v709_v39 }
  0x26   : > { %658 = vmatprep.subr.bf16.mxu1 %v710_v40 }
  0x28   : > { %217 = vrot.lane.b32.xlu0 %v710_v40, %s720_s2 }
  0x29   : > { %201 = vrot.lane.b32.xlu1 %v711_v41, %s720_s2  ;;  %659 = vmatpush3.bf16.msra.mxu1 %v711_v41 }
  0x2c   : > { %403 = vmatmul.mubr.bf16.vlgmr.msra.gmra.mxu1 %v575_v42  ;;  %437 = vperm.xlu0 %694, %v825_v16  }
  0x2d   : > { %410 = vmatprep.mubr.bf16.mxu1 %v578_v43  ;;  %442 = vperm.xlu1 %695, %v830_v17  }
  0x30   : > { %452 = vperm.xlu0 %694, %v840_v19  }
  0x31   : > { %447 = vperm.xlu1 %695, %v835_v18  }
  0x34   : > { %411 = vmatmul.mubr.bf16.gmra.mxu1 %v577_v44  ;;  %462 = vperm.xlu0 %694, %v850_v21  }
  0x35   : > { %418 = vmatprep.mubr.bf16.mxu1 %v580_v45  ;;  %457 = vperm.xlu1 %695, %v845_v20  }
  0x38   : > { %472 = vperm.xlu0 %694, %v860_v23  }
  0x39   : > { %467 = vperm.xlu1 %695, %v855_v22  }
  0x3c   : > { %419 = vmatmul.mubr.bf16.gmra.mxu1 %v579_v46 }
  0x3d   : > { %426 = vmatprep.mubr.bf16.mxu1 %v582_v47 }
  0x44   : > { %427 = vmatmul.mubr.bf16.gmra.mxu1 %v581_v49 }
  0x7e   : > { %v232_v50 = vpop.permute.xlu0 %231 }
  0x7f   : > { %604 = vmatprep.subr.bf16.mxu0 %v232_v50  ;;  %v230_v51 = vpop.permute.xlu1 %229 }
  0x82   : > { %v216_v52 = vpop.permute.xlu0 %215 }
  0x83   : > { %605 = vmatpush3.bf16.msra.mxu0 %v216_v52  ;;  %v214_v53 = vpop.permute.xlu1 %213 }
  0x84   : > { %606 = vmatprep.subr.bf16.mxu0 %v230_v51 }
  0x86   : > { %v228_v54 = vpop.permute.xlu0 %227 }
  0x87   : > { %607 = vmatpush3.bf16.msra.mxu0 %v214_v53  ;;  %v212_v55 = vpop.permute.xlu1 %211 }
  0x88   : > { %608 = vmatprep.subr.bf16.mxu0 %v228_v54 }
  0x8a   : > { %v226_v56 = vpop.permute.xlu0 %225 }
  0x8b   : > { %609 = vmatpush3.bf16.msra.mxu0 %v212_v55  ;;  %v210_v57 = vpop.permute.xlu1 %209 }
  0x8c   : > { %610 = vmatprep.subr.bf16.mxu0 %v226_v56 }
  0x8e   : > { %v224_v58 = vpop.permute.xlu0 %223 }
  0x8f   : > { %611 = vmatpush3.bf16.msra.mxu0 %v210_v57  ;;  %v208_v59 = vpop.permute.xlu1 %207 }
  0x90   : > { %612 = vmatprep.subr.bf16.mxu0 %v224_v58 }
  0x92   : > { %v222_v60 = vpop.permute.xlu0 %221 }
  0x93   : > { %613 = vmatpush3.bf16.msra.mxu0 %v208_v59  ;;  %v206_v61 = vpop.permute.xlu1 %205 }
  0x94   : > { %614 = vmatprep.subr.bf16.mxu0 %v222_v60 }
  0x96   : > { %v220_v62 = vpop.permute.xlu0 %219 }
  0x97   : > { %615 = vmatpush3.bf16.msra.mxu0 %v206_v61  ;;  %v204_v63 = vpop.permute.xlu1 %203 }
  0x98   : > { %616 = vmatprep.subr.bf16.mxu0 %v220_v62 }
  0x9a   : > { %v218_v24 = vpop.permute.xlu0 %217 }
  0x9b   : > { %617 = vmatpush3.bf16.msra.mxu0 %v204_v63  ;;  %v202_v25 = vpop.permute.xlu1 %201 }
  0x9c   : > { %618 = vmatprep.subr.bf16.mxu0 %v218_v24 }
  0x9f   : > { %619 = vmatpush3.bf16.msra.mxu0 %v202_v25 }
  0xa2   : > { %282 = vmatmul.mubr.bf16.vlgmr.msra.gmra.mxu0 %v551_v26 }
  0xa3   : > { %289 = vmatprep.mubr.bf16.mxu0 %v554_v27 }
  0xa7   : > { %v438_v46 = vpop.permute.xlu0 %437 }
  0xa8   : > { %v443_v50 = vpop.permute.xlu1 %442 }
  0xaa   : > { %290 = vmatmul.mubr.bf16.gmra.mxu0 %v553_v28 }
  0xab   : > { %297 = vmatprep.mubr.bf16.mxu0 %v556_v29 }
  0xac   : > { %v448_v24 = vpop.permute.xlu1 %447 }
  0xb2   : > { %298 = vmatmul.mubr.bf16.gmra.mxu0 %v555_v30 }
  0xb3   : > { %305 = vmatprep.mubr.bf16.mxu0 %v558_v31 }
  0xba   : > { %306 = vmatmul.mubr.bf16.gmra.mxu0 %v557_v32 }
  0xec   : > { %v660_v33 = vpop.f32.mrf.mxu1 }
  0xee   : > { %v661_v34 = vpop.f32.mrf.mxu1 }
  0xef   : > { %v662_v44 = vadd.f32 %v661_v34, %v660_v33 }
  0xf0   : > { %v663_v35 = vpop.f32.mrf.mxu1 }
  0xf2   : > { %v664_v36 = vpop.f32.mrf.mxu1 }
  0xf3   : > { %v665_v52 = vadd.f32 %v664_v36, %v663_v35 }
  0xf4   : > { %v666_v37 = vpop.f32.mrf.mxu1 }
  0xf6   : > { %v667_v38 = vpop.f32.mrf.mxu1 }
  0xf7   : > { %v668_v60 = vadd.f32 %v667_v38, %v666_v37  ;;  %v453_v38 = vpop.permute.xlu0 %452 }
  0xf8   : > { %v669_v39 = vpop.f32.mrf.mxu1 }
  0xfa   : > { %v670_v40 = vpop.f32.mrf.mxu1 }
  0xfb   : > { %v671_v30 = vadd.f32 %v670_v40, %v669_v39 }
  0xfc   : > { %v672_v42 = vpop.f32.mrf.mxu1 }
  0xfe   : > { %v673_v48 = vpop.f32.mrf.mxu1 }
 0x100   : > { %v675_v56 = vpop.f32.mrf.mxu1 }
 0x102   : > { %v676_v26 = vpop.f32.mrf.mxu1 }
 0x104   : > { %v678_v35 = vpop.f32.mrf.mxu1 }
 0x162   : > { %v620_v41 = vpop.f32.mrf.mxu0 }
 0x164   : > { %v621_v43 = vpop.f32.mrf.mxu0 }
 0x165   : > { %v622_v45 = vadd.f32 %v621_v43, %v620_v41  ;;  %v674_v43 = vadd.f32 %v673_v48, %v672_v42 }
 0x166   : > { %v623_v47 = vpop.f32.mrf.mxu0 }
 0x167   : > { %v405_v49 = vadd.f32 %v662_v44, %v622_v45 }
 0x168   : > { %v624_v51 = vpop.f32.mrf.mxu0 }
 0x169   : > { %v475_v53 = vadd.f32 %v438_v46, %v405_v49  ;;  %v625_v54 = vadd.f32 %v624_v51, %v623_v47  ;;  %v679_v49 = vpop.f32.mrf.mxu1 }
 0x16a   : > { %v626_v55 = vpop.f32.mrf.mxu0 }
 0x16b   : > { %v483_v57 = vmax.f32 %v475_v53, 0.0  ;;  %v408_v58 = vadd.f32 %v665_v52, %v625_v54  ;;  %v677_v53 = vadd.f32 %v676_v26, %v675_v56 }
 0x16c   : > { %v627_v59 = vpop.f32.mrf.mxu0 }
 0x16d   : > { %v595_v61 = vpack.c.bf16 %v483_v57, %v483_v57  ;;  %v628_v62 = vadd.f32 %v627_v59, %v626_v55  ;;  %v476_v63 = vadd.f32 %v443_v50, %v408_v58  ;;  %v458_v50 = vpop.permute.xlu1 %457  ;;  %v681_v57 = vpop.f32.mrf.mxu1 }
 0x16e   : > { %v629_v25 = vpop.f32.mrf.mxu0  ;;  %v463_v59 = vpop.permute.xlu0 %462 }
 0x16f   : > { %527 = vst.msk [vmem:[%s949_s13] sm:$0xf] %vm526_vm0, %v595_v61  ;;  %v484_v27 = vmax.f32 %v476_v63, 0.0  ;;  %v413_v28 = vadd.f32 %v668_v60, %v628_v62  ;;  %v680_v62 = vadd.f32 %v679_v49, %v678_v35 }
 0x170   : > { %v630_v29 = vpop.f32.mrf.mxu0 }
 0x171   : > { %v596_v31 = vpack.c.bf16 %v484_v27, %v484_v27  ;;  %v631_v32 = vadd.f32 %v630_v29, %v629_v25  ;;  %v477_v33 = vadd.f32 %v448_v24, %v413_v28  ;;  %v682_v25 = vpop.f32.mrf.mxu1  ;;  %v468_v28 = vpop.permute.xlu1 %467 }
 0x172   : > { %v632_v34 = vpop.f32.mrf.mxu0 }
 0x173   : > { %528 = vst.msk [vmem:[%s949_s13 + $0x4] sm:$0xf] %vm526_vm0, %v596_v31  ;;  %v416_v36 = vadd.f32 %v671_v30, %v631_v32  ;;  %v485_v37 = vmax.f32 %v477_v33, 0.0  ;;  %v683_v31 = vadd.f32 %v682_v25, %v681_v57 }
 0x174   : > { %v633_v41 = vpop.f32.mrf.mxu0 }
 0x175   : > { %v478_v44 = vadd.f32 %v453_v38, %v416_v36  ;;  %v597_v45 = vpack.c.bf16 %v485_v37, %v485_v37  ;;  %v634_v46 = vadd.f32 %v633_v41, %v632_v34  ;;  %v473_v36 = vpop.permute.xlu0 %472 }
 0x176   : > { %v635_v47 = vpop.f32.mrf.mxu0 }
 0x177   : > { %v486_v39 = vmax.f32 %v478_v44, 0.0  ;;  %529 = vst.msk [vmem:[%s949_s13 + $0x8] sm:$0xf] %vm526_vm0, %v597_v45  ;;  %v421_v40 = vadd.f32 %v674_v43, %v634_v46 }
 0x178   : > { %v636_v51 = vpop.f32.mrf.mxu0 }
 0x179   : > { %v598_v52 = vpack.c.bf16 %v486_v39, %v486_v39  ;;  %v479_v54 = vadd.f32 %v458_v50, %v421_v40  ;;  %v637_v55 = vadd.f32 %v636_v51, %v635_v47 }
 0x17a   : > { %v638_v58 = vpop.f32.mrf.mxu0 }
 0x17b   : > { %530 = vst.msk [vmem:[%s949_s13 + $0xc] sm:$0xf] %vm526_vm0, %v598_v52  ;;  %v487_v42 = vmax.f32 %v479_v54, 0.0  ;;  %v424_v48 = vadd.f32 %v677_v53, %v637_v55 }
 0x17c   : > { %v639_v60 = vpop.f32.mrf.mxu0 }
 0x17d   : > { %v599_v61 = vpack.c.bf16 %v487_v42, %v487_v42  ;;  %v480_v63 = vadd.f32 %v463_v59, %v424_v48  ;;  %v640_v24 = vadd.f32 %v639_v60, %v638_v58 }
 0x17e   : > { %v641_v27 = vpop.f32.mrf.mxu0 }
 0x17f   : > { %531 = vst.msk [vmem:[%s949_s13 + $0x10] sm:$0xf] %vm526_vm0, %v599_v61  ;;  %v488_v56 = vmax.f32 %v480_v63, 0.0  ;;  %v429_v26 = vadd.f32 %v680_v62, %v640_v24 }
 0x180   : > { %v642_v29 = vpop.f32.mrf.mxu0 }
 0x181   : > { %v600_v30 = vpack.c.bf16 %v488_v56, %v488_v56  ;;  %v481_v32 = vadd.f32 %v468_v28, %v429_v26  ;;  %v643_v33 = vadd.f32 %v642_v29, %v641_v27 }
 0x183   : > { %532 = vst.msk [vmem:[%s949_s13 + $0x14] sm:$0xf] %vm526_vm0, %v600_v30  ;;  %v489_v34 = vmax.f32 %v481_v32, 0.0  ;;  %v432_v35 = vadd.f32 %v683_v31, %v643_v33 }
 0x185   : > { %v601_v37 = vpack.c.bf16 %v489_v34, %v489_v34  ;;  %v482_v38 = vadd.f32 %v473_v36, %v432_v35 }
 0x187   : > { %533 = vst.msk [vmem:[%s949_s13 + $0x18] sm:$0xf] %vm526_vm0, %v601_v37  ;;  %v490_v41 = vmax.f32 %v482_v38, 0.0  ;;  %43 = sbr.rel (!%p41_p0) target bundleno = 9 (0x9), region = 41 }
 0x189   : > { %v602_v43 = vpack.c.bf16 %v490_v41, %v490_v41 }
 0x18b   : > { %534 = vst.msk [vmem:[%s949_s13 + $0x1c] sm:$0xf] %vm526_vm0, %v602_v43 }

// kernel: atari_body_forward.5
= control target key start
LH: loop header
LB: loop body
LE: loop exit
PB: predicated region body
PF: predicated region fallthrough
CT: control target
= control target key end

     0   :  { %s1000_s21 = smov 0   ;;  %s1221_s0 = inlined_call_operand.vmem [shape: bf16[1,9,64,18], index: 0, kind: input, shape index: {}]   ;;  %s1222_s1 = inlined_call_operand.vmem [shape: bf16[64,576], index: 1, kind: input, shape index: {}]   ;;  %s1223_s3 = inlined_call_operand.vmem [shape: bf16[1,7,64,14], index: 3, kind: output, shape index: {}]   ;;  %s1224_s2 = inlined_call_operand.vmem [shape: f32[64,1], index: 2, kind: input, shape index: {}]  }
   0x1   :  { %v843_v0 = vld [vmem:[%s1222_s1] sm:$0xff]  ;;  %v848_v1 = vld [vmem:[%s1222_s1 + $0x8] sm:$0xff]  ;;  %v853_v2 = vld [vmem:[%s1222_s1 + $0x10] sm:$0xf] }
   0x2   :  { %1227 = vst [vmem:[#allocation2_spill] sm:$0xff] %v843_v0  ;;  %1228 = vst [vmem:[#allocation3_spill] sm:$0xff] %v848_v1  ;;  %v858_v3 = vld [vmem:[%s1222_s1 + $0x14] sm:$0xff]  ;;  %v863_v4 = vld [vmem:[%s1222_s1 + $0x1c] sm:$0xff] }
   0x3   :  { %1229 = vst [vmem:[#allocation4_spill] sm:$0xff] %v853_v2  ;;  %v868_v5 = vld [vmem:[%s1222_s1 + $0x24] sm:$0xf]  ;;  %v873_v6 = vld [vmem:[%s1222_s1 + $0x28] sm:$0xff]  ;;  %v878_v7 = vld [vmem:[%s1222_s1 + $0x30] sm:$0xff] }
   0x4   :  { %v883_v8 = vld [vmem:[%s1222_s1 + $0x38] sm:$0xf]  ;;  %v888_v9 = vld [vmem:[%s1222_s1 + $0x3c] sm:$0xff]  ;;  %v893_v10 = vld [vmem:[%s1222_s1 + $0x44] sm:$0xff] }
   0x5   :  { %v898_v11 = vld [vmem:[%s1222_s1 + $0x4c] sm:$0xf]  ;;  %v903_v12 = vld [vmem:[%s1222_s1 + $0x50] sm:$0xff]  ;;  %v908_v13 = vld [vmem:[%s1222_s1 + $0x58] sm:$0xff] }
   0x6   :  { %v913_v14 = vld [vmem:[%s1222_s1 + $0x60] sm:$0xf]  ;;  %v918_v15 = vld [vmem:[%s1222_s1 + $0x64] sm:$0xff]  ;;  %v923_v16 = vld [vmem:[%s1222_s1 + $0x6c] sm:$0xff] }
   0x7   :  { %v928_v17 = vld [vmem:[%s1222_s1 + $0x74] sm:$0xf]  ;;  %v933_v18 = vld [vmem:[%s1222_s1 + $0x78] sm:$0xff]  ;;  %v938_v19 = vld [vmem:[%s1222_s1 + $0x80] sm:$0xff] }
   0x8   :  { %v943_v20 = vld [vmem:[%s1222_s1 + $0x88] sm:$0xf]  ;;  %v948_v21 = vld [vmem:[%s1222_s1 + $0x8c] sm:$0xff]  ;;  %v953_v22 = vld [vmem:[%s1222_s1 + $0x94] sm:$0xff] }
   0x9   :  { %v958_v23 = vld [vmem:[%s1222_s1 + $0x9c] sm:$0xf]  ;;  %v963_v24 = vld [vmem:[%s1224_s2] sm:$0xff]  ;;  %v968_v25 = vld [vmem:[%s1224_s2 + $0x8] sm:$0xff] }
   0xa   :  { %v973_v26 = vld [vmem:[%s1224_s2 + $0x10] sm:$0xff]  ;;  %v978_v27 = vld [vmem:[%s1224_s2 + $0x18] sm:$0xff]  ;;  %v983_v28 = vld [vmem:[%s1224_s2 + $0x20] sm:$0xff] }
   0xb   :  { %v988_v29 = vld [vmem:[%s1224_s2 + $0x28] sm:$0xff]  ;;  %v993_v30 = vld [vmem:[%s1224_s2 + $0x30] sm:$0xff]  ;;  %v998_v31 = vld [vmem:[%s1224_s2 + $0x38] sm:$0xff] }
   0xc LB: > { %v1230_v1 = vld [vmem:[#allocation3_spill] sm:$0xff]  ;;  %v1231_v0 = vld [vmem:[#allocation2_spill] sm:$0xff]  ;;  %s748_s22 = sshll.u32 %s814_s21, 5  ;;  %v816_v32 = vmov 0   ;;  %s817_s2 = smov 126   ;;  %vm136_vm0 = vcmask 523264   ;;  %v697_v47 = vcombine.high %v873_v6, %v888_v9  ;;  %v698_v48 = vcombine.low %v878_v7, %v893_v10  ;;  %s814_s21 = sphi %s1000_s21, %s52_s21  }
   0xd   : > { %s1011_s25 = scalar_lea.vmem %s1221_s0, %s748_s22  ;;  %359 = vmatprep.subr.bf16.mxu1 %v816_v32  ;;  %254 = vmatprep.subr.bf16.mxu0 %v816_v32  ;;  %v695_v41 = vcombine.high %v1231_v0, %v858_v3  ;;  %v696_v46 = vcombine.low %v1230_v1, %v863_v4  ;;  %s818_s26 = smov 64   ;;  %v719_v49 = vcombine.low %v1231_v0, %v858_v3  ;;  %v1232_v2 = vld [vmem:[#allocation4_spill] sm:$0xff]  ;;  %vm671_vm1 = vcmask 109568  }
   0xe   : > { %v796_v33 = vld [vmem:[%s1011_s25 + $0x38] sm:$0xff]   ;;  %795 = vset.pattern.permute.xlu1 %v816_v32  ;;  %794 = vset.pattern.permute.xlu0 %v816_v32  ;;  %v797_v34 = vld [vmem:[%s1011_s25 + $0x30] sm:$0xff]   ;;  %v798_v35 = vld [vmem:[%s1011_s25 + $0x28] sm:$0xff]   ;;  %s819_s27 = smov 124   ;;  %v699_v50 = vcombine.high %v903_v12, %v918_v15  ;;  %v700_v51 = vcombine.low %v908_v13, %v923_v16  ;;  %v720_v52 = vcombine.low %v873_v6, %v888_v9  ;;  %s1192_s30 = scalar_lea.vmem %s1223_s3, %s748_s22 }
   0xf   : > { %219 = vrot.lane.b32.xlu0 %v796_v33, %s817_s2  ;;  %360 = vmatpush1.bf16.msra.mxu1 %v796_v33  ;;  %v799_v36 = vld [vmem:[%s1011_s25 + $0x20] sm:$0xff]   ;;  %v800_v37 = vld [vmem:[%s1011_s25 + $0x18] sm:$0xff]   ;;  %v801_v38 = vld [vmem:[%s1011_s25 + $0x10] sm:$0xff]   ;;  %v701_v53 = vcombine.high %v933_v18, %v948_v21  ;;  %v702_v54 = vcombine.low %v938_v19, %v953_v22  ;;  %v721_v55 = vcombine.low %v903_v12, %v918_v15  ;;  %s52_s21 = sadd.s32 1, %s814_s21  }
  0x10   : > { %361 = vmatprep.subr.bf16.mxu1 %v816_v32  ;;  %215 = vrot.lane.b32.xlu1 %v798_v35, %s817_s2  ;;  %v802_v39 = vld [vmem:[%s1011_s25 + $0x8] sm:$0xff]   ;;  %v804_v40 = vld [vmem:[%s1011_s25] sm:$0xff]   ;;  %v803_v42 = vld [vmem:[%s1011_s25 + $0x58] sm:$0xff]   ;;  %v722_v56 = vcombine.low %v933_v18, %v948_v21  ;;  %v732_v57 = vcombine.low %v913_v14, %v928_v17  ;;  %p49_p0 = scmp.ge.s32.totalorder %s52_s21, 7  }
  0x11   : > { %723 = vmatprep.mubr.msk.bf16.mxu1 %vm136_vm0, %v695_v41  ;;  %v806_v43 = vld [vmem:[%s1011_s25 + $0x50] sm:$0xff]   ;;  %v805_v44 = vld [vmem:[%s1011_s25 + $0x48] sm:$0xff]   ;;  %v807_v45 = vld [vmem:[%s1011_s25 + $0x40] sm:$0xff]  }
  0x13   : > { %217 = vrot.lane.b32.xlu0 %v797_v34, %s817_s2  ;;  %362 = vmatpush1.bf16.msra.mxu1 %v797_v34 }
  0x14   : > { %363 = vmatprep.subr.bf16.mxu1 %v816_v32  ;;  %213 = vrot.lane.b32.xlu1 %v799_v36, %s817_s2 }
  0x17   : > { %211 = vrot.lane.b32.xlu0 %v800_v37, %s817_s2  ;;  %364 = vmatpush1.bf16.msra.mxu1 %v798_v35 }
  0x18   : > { %365 = vmatprep.subr.bf16.mxu1 %v816_v32  ;;  %209 = vrot.lane.b32.xlu1 %v801_v38, %s817_s2 }
  0x1b   : > { %207 = vrot.lane.b32.xlu0 %v802_v39, %s817_s2  ;;  %366 = vmatpush1.bf16.msra.mxu1 %v799_v36 }
  0x1c   : > { %367 = vmatprep.subr.bf16.mxu1 %v816_v32  ;;  %205 = vrot.lane.b32.xlu1 %v804_v40, %s817_s2 }
  0x1f   : > { %227 = vrot.lane.b32.xlu0 %v803_v42, %s817_s2  ;;  %368 = vmatpush1.bf16.msra.mxu1 %v800_v37 }
  0x20   : > { %369 = vmatprep.subr.bf16.mxu1 %v816_v32  ;;  %225 = vrot.lane.b32.xlu1 %v806_v43, %s817_s2 }
  0x23   : > { %223 = vrot.lane.b32.xlu0 %v805_v44, %s817_s2  ;;  %370 = vmatpush1.bf16.msra.mxu1 %v801_v38 }
  0x24   : > { %371 = vmatprep.subr.bf16.mxu1 %v816_v32  ;;  %221 = vrot.lane.b32.xlu1 %v807_v45, %s817_s2 }
  0x27   : > { %120 = vrot.lane.b32.xlu0 %v695_v41, %s818_s26  ;;  %372 = vmatpush1.bf16.msra.mxu1 %v802_v39 }
  0x28   : > { %373 = vmatprep.subr.bf16.mxu1 %v816_v32  ;;  %122 = vrot.lane.b32.xlu1 %v696_v46, %s818_s26 }
  0x2b   : > { %474 = vrot.lane.b32.xlu0 %v796_v33, %s819_s27  ;;  %374 = vmatpush1.bf16.msra.mxu1 %v804_v40 }
  0x2c   : > { %383 = vmatprep.subr.bf16.mxu1 %v816_v32  ;;  %472 = vrot.lane.b32.xlu1 %v797_v34, %s819_s27 }
  0x2f   : > { %470 = vrot.lane.b32.xlu0 %v798_v35, %s819_s27  ;;  %384 = vmatpush2.bf16.msra.mxu1 %v803_v42 }
  0x30   : > { %385 = vmatprep.subr.bf16.mxu1 %v816_v32  ;;  %468 = vrot.lane.b32.xlu1 %v799_v36, %s819_s27 }
  0x33   : > { %466 = vrot.lane.b32.xlu0 %v800_v37, %s819_s27  ;;  %386 = vmatpush2.bf16.msra.mxu1 %v806_v43 }
  0x34   : > { %387 = vmatprep.subr.bf16.mxu1 %v816_v32  ;;  %464 = vrot.lane.b32.xlu1 %v801_v38, %s819_s27 }
  0x37   : > { %124 = vrot.lane.b32.xlu0 %v697_v47, %s818_s26  ;;  %388 = vmatpush2.bf16.msra.mxu1 %v805_v44 }
  0x38   : > { %389 = vmatprep.subr.bf16.mxu1 %v816_v32  ;;  %126 = vrot.lane.b32.xlu1 %v698_v48, %s818_s26 }
  0x3b   : > { %462 = vrot.lane.b32.xlu0 %v802_v39, %s819_s27  ;;  %390 = vmatpush2.bf16.msra.mxu1 %v807_v45 }
  0x3c   : > { %758 = vmatprep.subr.bf16.mxu1 %v816_v32  ;;  %460 = vrot.lane.b32.xlu1 %v804_v40, %s819_s27 }
  0x3e   : > { %392 = vmatmul.mubr.bf16.vlgmr.msra.gmra.mxu1 %v719_v49 }
  0x3f   : > { %128 = vrot.lane.b32.xlu0 %v699_v50, %s818_s26  ;;  %724 = vmatprep.mubr.msk.bf16.mxu1 %vm136_vm0, %v697_v47 }
  0x40   : > { %130 = vrot.lane.b32.xlu1 %v700_v51, %s818_s26 }
  0x43   : > { %482 = vrot.lane.b32.xlu0 %v803_v42, %s819_s27 }
  0x44   : > { %480 = vrot.lane.b32.xlu1 %v806_v43, %s819_s27 }
  0x46   : > { %400 = vmatmul.mubr.bf16.gmra.mxu1 %v720_v52 }
  0x47   : > { %132 = vrot.lane.b32.xlu0 %v701_v53, %s818_s26  ;;  %725 = vmatprep.mubr.msk.bf16.mxu1 %vm136_vm0, %v699_v50 }
  0x48   : > { %134 = vrot.lane.b32.xlu1 %v702_v54, %s818_s26 }
  0x4b   : > { %478 = vrot.lane.b32.xlu0 %v805_v44, %s819_s27 }
  0x4c   : > { %476 = vrot.lane.b32.xlu1 %v807_v45, %s819_s27 }
  0x4e   : > { %408 = vmatmul.mubr.bf16.gmra.mxu1 %v721_v55 }
  0x4f   : > { %726 = vmatprep.mubr.msk.bf16.mxu1 %vm136_vm0, %v701_v53  ;;  %583 = vperm.xlu0 %794, %v963_v24  }
  0x50   : > { %588 = vperm.xlu1 %795, %v968_v25  }
  0x53   : > { %598 = vperm.xlu0 %794, %v978_v27  }
  0x54   : > { %593 = vperm.xlu1 %795, %v973_v26  }
  0x56   : > { %416 = vmatmul.mubr.bf16.gmra.mxu1 %v722_v56 }
  0x57   : > { %737 = vmatprep.mubr.msk.bf16.mxu1 %vm136_vm0, %v732_v57  ;;  %608 = vperm.xlu0 %794, %v988_v29  }
  0x58   : > { %603 = vperm.xlu1 %795, %v983_v28  }
  0x5b   : > { %618 = vperm.xlu0 %794, %v998_v31  }
  0x5c   : > { %613 = vperm.xlu1 %795, %v993_v30  }
  0x81   : > { %v220_v58 = vpop.permute.xlu0 %219 }
  0x82   : > { %255 = vmatpush1.bf16.msra.mxu0 %v220_v58  ;;  %v216_v59 = vpop.permute.xlu1 %215 }
  0x83   : > { %256 = vmatprep.subr.bf16.mxu0 %v816_v32 }
  0x85   : > { %v218_v60 = vpop.permute.xlu0 %217 }
  0x86   : > { %257 = vmatpush1.bf16.msra.mxu0 %v218_v60  ;;  %v214_v61 = vpop.permute.xlu1 %213 }
  0x87   : > { %258 = vmatprep.subr.bf16.mxu0 %v816_v32 }
  0x89   : > { %v212_v62 = vpop.permute.xlu0 %211 }
  0x8a   : > { %259 = vmatpush1.bf16.msra.mxu0 %v216_v59  ;;  %v210_v63 = vpop.permute.xlu1 %209 }
  0x8b   : > { %260 = vmatprep.subr.bf16.mxu0 %v816_v32 }
  0x8d   : > { %v208_v33 = vpop.permute.xlu0 %207 }
  0x8e   : > { %261 = vmatpush1.bf16.msra.mxu0 %v214_v61  ;;  %v206_v34 = vpop.permute.xlu1 %205 }
  0x8f   : > { %262 = vmatprep.subr.bf16.mxu0 %v816_v32 }
  0x91   : > { %v228_v35 = vpop.permute.xlu0 %227 }
  0x92   : > { %263 = vmatpush1.bf16.msra.mxu0 %v212_v62  ;;  %v226_v36 = vpop.permute.xlu1 %225 }
  0x93   : > { %264 = vmatprep.subr.bf16.mxu0 %v816_v32 }
  0x95   : > { %v224_v37 = vpop.permute.xlu0 %223 }
  0x96   : > { %265 = vmatpush1.bf16.msra.mxu0 %v210_v63  ;;  %v222_v38 = vpop.permute.xlu1 %221  ;;  %v728_v63 = vcombine.low %v1232_v2, %v868_v5 }
  0x97   : > { %266 = vmatprep.subr.bf16.mxu0 %v816_v32 }
  0x99   : > { %v121_v39 = vpop.permute.xlu0 %120 }
  0x9a   : > { %267 = vmatpush1.bf16.msra.mxu0 %v208_v33  ;;  %v123_v40 = vpop.permute.xlu1 %122  ;;  %v731_v33 = vcombine.high %v908_v13, %v923_v16 }
  0x9b   : > { %268 = vmatprep.subr.bf16.mxu0 %v816_v32  ;;  %715 = vmatprep.mubr.msk.bf16.mxu0 %vm136_vm0, %v123_v40  ;;  %v137_v51 = vsel %vm136_vm0, %v121_v39, %v123_v40 }
  0x9d   : > { %v475_v41 = vpop.permute.xlu0 %474 }
  0x9e   : > { %269 = vmatpush1.bf16.msra.mxu0 %v206_v34  ;;  %770 = vmatpush1.bf16.msra.mxu1 %v475_v41  ;;  %v473_v42 = vpop.permute.xlu1 %472  ;;  %v734_v34 = vcombine.low %v943_v20, %v958_v23 }
  0x9f   : > { %278 = vmatprep.subr.bf16.mxu0 %v816_v32  ;;  %759 = vmatprep.subr.bf16.mxu1 %v816_v32 }
  0xa1   : > { %v471_v43 = vpop.permute.xlu0 %470 }
  0xa2   : > { %279 = vmatpush2.bf16.msra.mxu0 %v228_v35  ;;  %771 = vmatpush1.bf16.msra.mxu1 %v473_v42  ;;  %v469_v44 = vpop.permute.xlu1 %468  ;;  %v733_v35 = vcombine.high %v938_v19, %v953_v22 }
  0xa3   : > { %280 = vmatprep.subr.bf16.mxu0 %v816_v32  ;;  %760 = vmatprep.subr.bf16.mxu1 %v816_v32 }
  0xa5   : > { %v467_v45 = vpop.permute.xlu0 %466 }
  0xa6   : > { %281 = vmatpush2.bf16.msra.mxu0 %v226_v36  ;;  %772 = vmatpush1.bf16.msra.mxu1 %v471_v43  ;;  %v465_v46 = vpop.permute.xlu1 %464  ;;  %v727_v36 = vcombine.high %v1230_v1, %v863_v4 }
  0xa7   : > { %282 = vmatprep.subr.bf16.mxu0 %v816_v32  ;;  %761 = vmatprep.subr.bf16.mxu1 %v816_v32 }
  0xa9   : > { %v125_v47 = vpop.permute.xlu0 %124 }
  0xaa   : > { %283 = vmatpush2.bf16.msra.mxu0 %v224_v37  ;;  %773 = vmatpush1.bf16.msra.mxu1 %v469_v44  ;;  %v127_v48 = vpop.permute.xlu1 %126  ;;  %v730_v37 = vcombine.low %v883_v8, %v898_v11 }
  0xab   : > { %284 = vmatprep.subr.bf16.mxu0 %v816_v32  ;;  %762 = vmatprep.subr.bf16.mxu1 %v816_v32  ;;  %v138_v54 = vsel %vm136_vm0, %v125_v47, %v127_v48 }
  0xad   : > { %v463_v49 = vpop.permute.xlu0 %462 }
  0xae   : > { %285 = vmatpush2.bf16.msra.mxu0 %v222_v38  ;;  %774 = vmatpush1.bf16.msra.mxu1 %v467_v45  ;;  %v461_v50 = vpop.permute.xlu1 %460  ;;  %v729_v38 = vcombine.high %v878_v7, %v893_v10 }
  0xaf   : > { %508 = vmatprep.subr.bf16.mxu0 %v816_v32  ;;  %763 = vmatprep.subr.bf16.mxu1 %v816_v32 }
  0xb1   : > { %287 = vmatmul.mubr.bf16.vlgmr.msra.gmra.mxu0 %v137_v51  ;;  %v129_v52 = vpop.permute.xlu0 %128 }
  0xb2   : > { %509 = vmatpush1.bf16.msra.mxu0 %v475_v41  ;;  %775 = vmatpush1.bf16.msra.mxu1 %v465_v46  ;;  %v131_v53 = vpop.permute.xlu1 %130 }
  0xb3   : > { %510 = vmatprep.subr.bf16.mxu0 %v816_v32  ;;  %764 = vmatprep.subr.bf16.mxu1 %v816_v32  ;;  %v139_v58 = vsel %vm136_vm0, %v129_v52, %v131_v53 }
  0xb4   : > { %716 = vmatprep.mubr.msk.bf16.mxu0 %vm136_vm0, %v127_v48 }
  0xb5   : > { %v483_v55 = vpop.permute.xlu0 %482 }
  0xb6   : > { %511 = vmatpush1.bf16.msra.mxu0 %v473_v42  ;;  %776 = vmatpush1.bf16.msra.mxu1 %v463_v49  ;;  %v481_v56 = vpop.permute.xlu1 %480 }
  0xb7   : > { %512 = vmatprep.subr.bf16.mxu0 %v816_v32  ;;  %765 = vmatprep.subr.bf16.mxu1 %v816_v32 }
  0xb9   : > { %295 = vmatmul.mubr.bf16.gmra.mxu0 %v138_v54  ;;  %v133_v57 = vpop.permute.xlu0 %132 }
  0xba   : > { %513 = vmatpush1.bf16.msra.mxu0 %v471_v43  ;;  %777 = vmatpush1.bf16.msra.mxu1 %v461_v50  ;;  %v135_v59 = vpop.permute.xlu1 %134 }
  0xbb   : > { %514 = vmatprep.subr.bf16.mxu0 %v816_v32  ;;  %766 = vmatprep.subr.bf16.mxu1 %v816_v32  ;;  %v140_v61 = vsel %vm136_vm0, %v133_v57, %v135_v59 }
  0xbc   : > { %717 = vmatprep.mubr.msk.bf16.mxu0 %vm136_vm0, %v131_v53 }
  0xbd   : > { %v479_v60 = vpop.permute.xlu0 %478 }
  0xbe   : > { %515 = vmatpush1.bf16.msra.mxu0 %v469_v44  ;;  %778 = vmatpush2.bf16.msra.mxu1 %v483_v55  ;;  %v477_v62 = vpop.permute.xlu1 %476 }
  0xbf   : > { %516 = vmatprep.subr.bf16.mxu0 %v816_v32  ;;  %767 = vmatprep.subr.bf16.mxu1 %v816_v32 }
  0xc1   : > { %303 = vmatmul.mubr.bf16.gmra.mxu0 %v139_v58 }
  0xc2   : > { %517 = vmatpush1.bf16.msra.mxu0 %v467_v45  ;;  %779 = vmatpush2.bf16.msra.mxu1 %v481_v56 }
  0xc3   : > { %518 = vmatprep.subr.bf16.mxu0 %v816_v32  ;;  %768 = vmatprep.subr.bf16.mxu1 %v816_v32 }
  0xc4   : > { %718 = vmatprep.mubr.msk.bf16.mxu0 %vm136_vm0, %v135_v59 }
  0xc6   : > { %519 = vmatpush1.bf16.msra.mxu0 %v465_v46  ;;  %780 = vmatpush2.bf16.msra.mxu1 %v479_v60 }
  0xc7   : > { %520 = vmatprep.subr.bf16.mxu0 %v816_v32  ;;  %769 = vmatprep.subr.bf16.mxu1 %v816_v32 }
  0xc9   : > { %311 = vmatmul.mubr.bf16.gmra.mxu0 %v140_v61 }
  0xca   : > { %521 = vmatpush1.bf16.msra.mxu0 %v463_v49  ;;  %781 = vmatpush2.bf16.msra.mxu1 %v477_v62 }
  0xcb   : > { %522 = vmatprep.subr.bf16.mxu0 %v816_v32  ;;  %735 = vmatprep.mubr.msk.bf16.mxu0 %vm136_vm0, %v728_v63 }
  0xcd   : > { %557 = vmatmul.mubr.bf16.vlgmr.msra.gmra.mxu1 %v731_v33 }
  0xce   : > { %523 = vmatpush1.bf16.msra.mxu0 %v461_v50  ;;  %738 = vmatprep.mubr.msk.bf16.mxu1 %vm136_vm0, %v734_v34  ;;  %v584_v34 = vpop.permute.xlu0 %583 }
  0xcf   : > { %532 = vmatprep.subr.bf16.mxu0 %v816_v32 }
  0xd2   : > { %533 = vmatpush2.bf16.msra.mxu0 %v483_v55 }
  0xd3   : > { %534 = vmatprep.subr.bf16.mxu0 %v816_v32 }
  0xd5   : > { %565 = vmatmul.mubr.bf16.gmra.mxu1 %v733_v35 }
  0xd6   : > { %535 = vmatpush2.bf16.msra.mxu0 %v481_v56 }
  0xd7   : > { %536 = vmatprep.subr.bf16.mxu0 %v816_v32 }
  0xda   : > { %537 = vmatpush2.bf16.msra.mxu0 %v479_v60 }
  0xdb   : > { %538 = vmatprep.subr.bf16.mxu0 %v816_v32 }
  0xde   : > { %539 = vmatpush2.bf16.msra.mxu0 %v477_v62  ;;  %v589_v62 = vpop.permute.xlu1 %588 }
  0xe1   : > { %541 = vmatmul.mubr.bf16.vlgmr.msra.gmra.mxu0 %v727_v36 }
  0xe2   : > { %736 = vmatprep.mubr.msk.bf16.mxu0 %vm136_vm0, %v730_v37  ;;  %v1183_v36 = vpop.permute.xlu1 %593 }
  0xe9   : > { %549 = vmatmul.mubr.bf16.gmra.mxu0 %v729_v38 }
  0xfe   : > { %v1171_v39 = vpop.f32.mrf.mxu1 }
 0x100   : > { %v395_v40 = vpop.f32.mrf.mxu1 }
 0x102   : > { %v1173_v41 = vpop.f32.mrf.mxu1 }
 0x104   : > { %v398_v32 = vpop.f32.mrf.mxu1 }
 0x105   : > { %v1185_v32 = vpop.permute.xlu0 %598 }
 0x106   : > { %v1175_v42 = vpop.f32.mrf.mxu1 }
 0x108   : > { %v403_v43 = vpop.f32.mrf.mxu1 }
 0x10a   : > { %v1177_v44 = vpop.f32.mrf.mxu1 }
 0x10c   : > { %v406_v45 = vpop.f32.mrf.mxu1 }
 0x10d   : > { %v604_v45 = vpop.permute.xlu1 %603 }
 0x10e   : > { %v409_v46 = vpop.f32.mrf.mxu1 }
 0x110   : > { %v411_v47 = vpop.f32.mrf.mxu1 }
 0x112   : > { %v412_v48 = vpop.f32.mrf.mxu1 }
 0x114   : > { %v414_v49 = vpop.f32.mrf.mxu1 }
 0x116   : > { %v417_v50 = vpop.f32.mrf.mxu1 }
 0x118   : > { %v419_v51 = vpop.f32.mrf.mxu1 }
 0x11a   : > { %v420_v52 = vpop.f32.mrf.mxu1 }
 0x11c   : > { %v422_v53 = vpop.f32.mrf.mxu1 }
 0x171   : > { %v288_v54 = vpop.f32.mrf.mxu0 }
 0x173   : > { %v290_v55 = vpop.f32.mrf.mxu0 }
 0x175   : > { %v291_v56 = vpop.f32.mrf.mxu0 }
 0x177   : > { %v293_v57 = vpop.f32.mrf.mxu0 }
 0x179   : > { %v1179_v58 = vpop.f32.mrf.mxu0 }
 0x17b   : > { %v298_v59 = vpop.f32.mrf.mxu0 }
 0x17d   : > { %v1181_v60 = vpop.f32.mrf.mxu0 }
 0x17f   : > { %v301_v61 = vpop.f32.mrf.mxu0 }
 0x181   : > { %v304_v63 = vpop.f32.mrf.mxu0 }
 0x182   : > { %v410_v40 = vadd.f32 %v409_v46, %v304_v63 }
 0x183   : > { %v306_v33 = vpop.f32.mrf.mxu0 }
 0x184   : > { %v609_v33 = vpop.permute.xlu0 %608 }
 0x185   : > { %v307_v35 = vpop.f32.mrf.mxu0 }
 0x186   : > { %v413_v51 = vadd.f32 %v412_v48, %v307_v35 }
 0x187   : > { %v309_v37 = vpop.f32.mrf.mxu0 }
 0x188   : > { %v614_v37 = vpop.permute.xlu1 %613 }
 0x189   : > { %v312_v38 = vpop.f32.mrf.mxu0 }
 0x18a   : > { %v418_v0 = vadd.f32 %v417_v50, %v312_v38 }
 0x18b   : > { %v314_v43 = vpop.f32.mrf.mxu0 }
 0x18d   : > { %v558_v47 = vpop.f32.mrf.mxu1  ;;  %v315_v49 = vpop.f32.mrf.mxu0 }
 0x18e   : > { %v577_v53 = vadd.f32 %v558_v47, %v410_v40  ;;  %v421_v50 = vadd.f32 %v420_v52, %v315_v49 }
 0x18f   : > { %v560_v55 = vpop.f32.mrf.mxu1  ;;  %v317_v57 = vpop.f32.mrf.mxu0 }
 0x190   : > { %v625_v59 = vadd.f32 %v604_v45, %v577_v53  ;;  %v619_v53 = vpop.permute.xlu0 %618 }
 0x191   : > { %v561_v61 = vpop.f32.mrf.mxu1 }
 0x192   : > { %v578_v1 = vadd.f32 %v561_v61, %v413_v51  ;;  %v633_v2 = vmax.f32 %v625_v59, 0.0 }
 0x193   : > { %v563_v46 = vpop.f32.mrf.mxu1 }
 0x194   : > { %v626_v48 = vadd.f32 %v609_v33, %v578_v1  ;;  %v753_v63 = vpack.c.bf16 %v633_v2, %v633_v2  ;;  %v394_v33 = vadd.f32 %v1171_v39, %v288_v54 }
 0x195   : > { %v566_v35 = vpop.f32.mrf.mxu1 }
 0x196   : > { %v634_v40 = vmax.f32 %v626_v48, 0.0  ;;  %676 = vst.msk [vmem:[%s1192_s30 + $0x10] sm:$0xf] %vm671_vm1, %v753_v63  ;;  %v579_v38 = vadd.f32 %v566_v35, %v418_v0  ;;  %v397_v48 = vadd.f32 %v1173_v41, %v291_v56  ;;  %v405_v41 = vadd.f32 %v1177_v44, %v1181_v60 }
 0x197   : > { %v568_v43 = vpop.f32.mrf.mxu1 }
 0x198   : > { %v754_v45 = vpack.c.bf16 %v634_v40, %v634_v40  ;;  %v627_v47 = vadd.f32 %v614_v37, %v579_v38  ;;  %v402_v38 = vadd.f32 %v1175_v42, %v1179_v58 }
 0x199   : > { %v569_v51 = vpop.f32.mrf.mxu1 }
 0x19a   : > { %677 = vst.msk [vmem:[%s1192_s30 + $0x14] sm:$0xf] %vm671_vm1, %v754_v45  ;;  %v580_v55 = vadd.f32 %v569_v51, %v421_v50  ;;  %v635_v57 = vmax.f32 %v627_v47, 0.0 }
 0x19b   : > { %v571_v1 = vpop.f32.mrf.mxu1 }
 0x19c   : > { %v628_v2 = vadd.f32 %v619_v53, %v580_v55  ;;  %v755_v59 = vpack.c.bf16 %v635_v57, %v635_v57 }
 0x19e   : > { %v636_v61 = vmax.f32 %v628_v2, 0.0  ;;  %678 = vst.msk [vmem:[%s1192_s30 + $0x18] sm:$0xf] %vm671_vm1, %v755_v59 }
 0x1a0   : > { %v756_v0 = vpack.c.bf16 %v636_v61, %v636_v61 }
 0x1a1   : > { %v542_v52 = vpop.f32.mrf.mxu0 }
 0x1a2   : > { %679 = vst.msk [vmem:[%s1192_s30 + $0x1c] sm:$0xf] %vm671_vm1, %v756_v0  ;;  %v573_v49 = vadd.f32 %v542_v52, %v394_v33 }
 0x1a3   : > { %v544_v46 = vpop.f32.mrf.mxu0 }
 0x1a4   : > { %v621_v63 = vadd.f32 %v584_v34, %v573_v49 }
 0x1a5   : > { %v545_v35 = vpop.f32.mrf.mxu0 }
 0x1a6   : > { %v629_v37 = vmax.f32 %v621_v63, 0.0  ;;  %v574_v40 = vadd.f32 %v545_v35, %v397_v48 }
 0x1a7   : > { %v547_v50 = vpop.f32.mrf.mxu0 }
 0x1a8   : > { %v749_v43 = vpack.c.bf16 %v629_v37, %v629_v37  ;;  %v622_v39 = vadd.f32 %v589_v62, %v574_v40 }
 0x1a9   : > { %v550_v54 = vpop.f32.mrf.mxu0 }
 0x1aa   : > { %672 = vst.msk [vmem:[%s1192_s30] sm:$0xf] %vm671_vm1, %v749_v43  ;;  %v630_v45 = vmax.f32 %v622_v39, 0.0  ;;  %v575_v47 = vadd.f32 %v550_v54, %v402_v38 }
 0x1ab   : > { %v552_v51 = vpop.f32.mrf.mxu0 }
 0x1ac   : > { %v750_v56 = vpack.c.bf16 %v630_v45, %v630_v45  ;;  %v623_v34 = vadd.f32 %v1183_v36, %v575_v47 }
 0x1ad   : > { %v553_v53 = vpop.f32.mrf.mxu0 }
 0x1ae   : > { %673 = vst.msk [vmem:[%s1192_s30 + $0x4] sm:$0xf] %vm671_vm1, %v750_v56  ;;  %v631_v42 = vmax.f32 %v623_v34, 0.0  ;;  %v576_v58 = vadd.f32 %v553_v53, %v405_v41 }
 0x1af   : > { %v555_v62 = vpop.f32.mrf.mxu0 }
 0x1b0   : > { %v751_v55 = vpack.c.bf16 %v631_v42, %v631_v42  ;;  %v624_v57 = vadd.f32 %v1185_v32, %v576_v58 }
 0x1b2   : > { %674 = vst.msk [vmem:[%s1192_s30 + $0x8] sm:$0xf] %vm671_vm1, %v751_v55  ;;  %v632_v1 = vmax.f32 %v624_v57, 0.0  ;;  %51 = sbr.rel (!%p49_p0) target bundleno = 12 (0xc), region = 41 }
 0x1b4   : > { %v752_v2 = vpack.c.bf16 %v632_v1, %v632_v1 }
 0x1b6   : > { %675 = vst.msk [vmem:[%s1192_s30 + $0xc] sm:$0xf] %vm671_vm1, %v752_v2 }

</bundles_post_ra>
